<compile_context>
chip_gen: v5e
topology: v5e:2x2
jax: 0.10.0
libtpu: 0.0.40
codegen_flags: <defaults>
</compile_context>

<pallas_src>
import functools

import jax
import jax.numpy as jnp
from jax.experimental import pallas as pl
from jax.experimental.pallas import tpu as pltpu


# ----------------------------------------------------------------------------
# Pallas kernel: one (batch, time-tile) block of the WaveNet forward.
# ----------------------------------------------------------------------------
def wavenet_kernel(
    x_ref,       # (Tt, Cin)          f32
    cond_ref,    # (Tt, Ccond)        f32
    w_in_ref,    # (Cin, H)           bf16
    b_in_ref,    # (1, H)             f32
    w_fg_ref,    # (L, 2H+Ccond, 2H)  bf16  rows: [shifted | residual | cond], cols: [f | g]
    b_fg_ref,    # (L, 1, 2H)         f32   [b_df+b_cf | b_dg+b_cg]
    w_sr_ref,    # (L, H, 2H)         bf16  cols: [skip | res]
    b_sr_ref,    # (L, 1, 2H)         f32
    w_e1_ref,    # (H, H)             bf16
    b_e1_ref,    # (1, H)             f32
    w_e2_ref,    # (H, COUT_PAD)      bf16 (zero-padded to 128 lanes)
    b_e2_ref,    # (1, COUT_PAD)      f32
    o_ref,       # (Tt, COUT_PAD)     f32
    carry_ref,   # (L, D_max, H)      f32   per-layer causal halo (scratch)
):
    Tt = x_ref.shape[0]
    H = w_in_ref.shape[1]
    L = w_fg_ref.shape[0]
    D_max = carry_ref.shape[1]
    bf16 = jnp.bfloat16

    # First time tile of each batch element: zero the causal-history carry.
    @pl.when(pl.program_id(1) == 0)
    def _():
        carry_ref[...] = jnp.zeros_like(carry_ref)

    x = x_ref[...].astype(bf16)
    cond = cond_ref[...].astype(bf16)

    # causal_convolution: kernel_size=1 causal conv == pointwise matmul.
    h = jnp.dot(x, w_in_ref[...], preferred_element_type=jnp.float32) + b_in_ref[...]

    residual = h                                   # (Tt, H) f32
    out = jnp.zeros((Tt, H), jnp.float32)          # skip accumulator

    for l in range(L):                             # static unroll over layers
        d = 2 ** l

        # Extended window = [previous D_max rows of this layer's input residual;
        #                    current tile's residual].  Zero carry at ti==0
        # reproduces the zero padding of the causal conv at sequence start.
        ext = jnp.concatenate([carry_ref[l], residual], axis=0)   # (D_max+Tt, H)
        carry_ref[l] = ext[Tt:Tt + D_max]                         # halo for next tile
        shifted = ext[D_max - d:D_max - d + Tt]                   # residual[t - d]

        # One lane-full MXU matmul per layer for filter+gate (+condition).
        x_cat = jnp.concatenate(
            [shifted.astype(bf16), residual.astype(bf16), cond], axis=1)
        fg = (jnp.dot(x_cat, w_fg_ref[l], preferred_element_type=jnp.float32)
              + b_fg_ref[l])                                      # (Tt, 2H)
        gated = jnp.tanh(fg[:, :H]) * jax.nn.sigmoid(fg[:, H:])

        # Fused skip / residual 1x1 convs.
        sr = (jnp.dot(gated.astype(bf16), w_sr_ref[l],
                      preferred_element_type=jnp.float32)
              + b_sr_ref[l])                                      # (Tt, 2H)
        out = out + sr[:, :H]
        residual = residual + sr[:, H:]

    y = jnp.maximum(out, 0.0)
    y = jnp.maximum(
        jnp.dot(y.astype(bf16), w_e1_ref[...],
                preferred_element_type=jnp.float32) + b_e1_ref[...], 0.0)
    y = (jnp.dot(y.astype(bf16), w_e2_ref[...],
                 preferred_element_type=jnp.float32) + b_e2_ref[...])
    o_ref[...] = y                                                # lane-dense (Tt, 128)


# ----------------------------------------------------------------------------
# Wrapper: grid over (batch, time tiles); weights fused & cast in f32->bf16.
# ----------------------------------------------------------------------------
@functools.partial(jax.jit, static_argnames=("tile_t",))
def wavenet_forward(x, condition, params, tile_t=8):
    """x: (B, Cin, T) f32; condition: (B, Ccond, T) f32 -> (B, Cout, T) f32."""
    B, Cin, T = x.shape
    Ccond = condition.shape[1]
    H = params["w_in"].shape[1]
    L = params["w_df"].shape[0]
    Cout = params["w_e2"].shape[1]

    COUT_PAD = 128                 # lane-dense output (unmasked stores)
    D_max = 2 ** (L - 1)           # causal halo carried between time tiles
    assert T % tile_t == 0, "T must be a multiple of tile_t (pad in caller)"
    # TODO(synk): pad T up to a multiple of tile_t for ragged sequence lengths.

    f32, bf16 = jnp.float32, jnp.bfloat16

    x_t = jnp.transpose(x, (0, 2, 1)).astype(f32)           # (B, T, Cin)
    c_t = jnp.transpose(condition, (0, 2, 1)).astype(f32)   # (B, T, Ccond)

    # --- Fuse per-layer weights (K-concat for f/g, N-concat for skip/res). ---
    w_f = jnp.concatenate(
        [params["w_df"][:, 0], params["w_df"][:, 1], params["w_cf"]], axis=1)
    w_g = jnp.concatenate(
        [params["w_dg"][:, 0], params["w_dg"][:, 1], params["w_cg"]], axis=1)
    w_fg = jnp.concatenate([w_f, w_g], axis=2).astype(bf16)          # (L, 2H+Ccond, 2H)
    b_fg = jnp.concatenate([params["b_df"] + params["b_cf"],
                            params["b_dg"] + params["b_cg"]], axis=2).astype(f32)

    w_sr = jnp.concatenate([params["w_skp"], params["w_res"]], axis=2).astype(bf16)
    b_sr = jnp.concatenate([params["b_skp"], params["b_res"]], axis=2).astype(f32)

    # Zero-pad the final projection to 128 output lanes.
    w_e2p = jnp.zeros((H, COUT_PAD), f32).at[:, :Cout].set(params["w_e2"]).astype(bf16)
    b_e2p = jnp.zeros((1, COUT_PAD), f32).at[:, :Cout].set(params["b_e2"])

    param_list = [
        params["w_in"].astype(bf16), params["b_in"].astype(f32),
        w_fg, b_fg, w_sr, b_sr,
        params["w_e1"].astype(bf16), params["b_e1"].astype(f32),
        w_e2p, b_e2p,
    ]

    def const_spec(p):
        nd = p.ndim
        return pl.BlockSpec(p.shape, lambda b, t, _nd=nd: (0,) * _nd)

    in_specs = [
        pl.BlockSpec((None, tile_t, Cin), lambda b, t: (b, t, 0)),
        pl.BlockSpec((None, tile_t, Ccond), lambda b, t: (b, t, 0)),
    ] + [const_spec(p) for p in param_list]

    out_specs = pl.BlockSpec((None, tile_t, COUT_PAD), lambda b, t: (b, t, 0))

    out = pl.pallas_call(
        wavenet_kernel,
        grid=(B, T // tile_t),
        in_specs=in_specs,
        out_specs=out_specs,
        out_shape=jax.ShapeDtypeStruct((B, T, COUT_PAD), jnp.float32),
        scratch_shapes=[pltpu.VMEM((L, D_max, H), jnp.float32)],
        compiler_params=pltpu.CompilerParams(
            # batch is independent -> parallel (v7x megacore); time carries
            # causal state through the scratch -> arbitrary (sequential).
            dimension_semantics=("parallel", "arbitrary"),
        ),
    )(x_t, c_t, *param_list)

    out = out[:, :, :Cout]                       # drop lane padding
    return jnp.transpose(out, (0, 2, 1))         # (B, Cout, T)


# ----------------------------------------------------------------------------
# Pure-JAX f32 reference (unfused, same semantics) for verification.
# ----------------------------------------------------------------------------
def wavenet_ref(x, condition, params):
    B, Cin, T = x.shape
    H = params["w_in"].shape[1]
    L = params["w_df"].shape[0]

    xt = jnp.transpose(x, (0, 2, 1))
    ct = jnp.transpose(condition, (0, 2, 1))

    h = xt @ params["w_in"] + params["b_in"]
    residual = h
    out = jnp.zeros_like(h)
    for l in range(L):
        d = 2 ** l
        if d < T:
            shifted = jnp.concatenate(
                [jnp.zeros((B, d, H), jnp.float32), residual[:, : T - d, :]], axis=1
            )
        else:
            shifted = jnp.zeros_like(residual)
        f = (shifted @ params["w_df"][l, 0] + residual @ params["w_df"][l, 1]
             + params["b_df"][l] + ct @ params["w_cf"][l] + params["b_cf"][l])
        g = (shifted @ params["w_dg"][l, 0] + residual @ params["w_dg"][l, 1]
             + params["b_dg"][l] + ct @ params["w_cg"][l] + params["b_cg"][l])
        gated = jnp.tanh(f) * jax.nn.sigmoid(g)
        out = out + gated @ params["w_skp"][l] + params["b_skp"][l]
        residual = residual + gated @ params["w_res"][l] + params["b_res"][l]
    y = jax.nn.relu(out)
    y = jax.nn.relu(y @ params["w_e1"] + params["b_e1"])
    y = y @ params["w_e2"] + params["b_e2"]
    return jnp.transpose(y, (0, 2, 1))


def init_params(key, input_channels, output_channels, hidden_channels,
                cond_channels, num_layers):
    ks = jax.random.split(key, 18)
    s = 0.05
    p = {
        "w_in": s * jax.random.normal(ks[0], (input_channels, hidden_channels), jnp.float32),
        "b_in": s * jax.random.normal(ks[1], (1, hidden_channels), jnp.float32),
        "w_df": s * jax.random.normal(ks[2], (num_layers, 2, hidden_channels, hidden_channels), jnp.float32),
        "b_df": s * jax.random.normal(ks[3], (num_layers, 1, hidden_channels), jnp.float32),
        "w_dg": s * jax.random.normal(ks[4], (num_layers, 2, hidden_channels, hidden_channels), jnp.float32),
        "b_dg": s * jax.random.normal(ks[5], (num_layers, 1, hidden_channels), jnp.float32),
        "w_cf": s * jax.random.normal(ks[6], (num_layers, cond_channels, hidden_channels), jnp.float32),
        "b_cf": s * jax.random.normal(ks[7], (num_layers, 1, hidden_channels), jnp.float32),
        "w_cg": s * jax.random.normal(ks[8], (num_layers, cond_channels, hidden_channels), jnp.float32),
        "b_cg": s * jax.random.normal(ks[9], (num_layers, 1, hidden_channels), jnp.float32),
        "w_res": s * jax.random.normal(ks[10], (num_layers, hidden_channels, hidden_channels), jnp.float32),
        "b_res": s * jax.random.normal(ks[11], (num_layers, 1, hidden_channels), jnp.float32),
        "w_skp": s * jax.random.normal(ks[12], (num_layers, hidden_channels, hidden_channels), jnp.float32),
        "b_skp": s * jax.random.normal(ks[13], (num_layers, 1, hidden_channels), jnp.float32),
        "w_e1": s * jax.random.normal(ks[14], (hidden_channels, hidden_channels), jnp.float32),
        "b_e1": s * jax.random.normal(ks[15], (1, hidden_channels), jnp.float32),
        "w_e2": s * jax.random.normal(ks[16], (hidden_channels, output_channels), jnp.float32),
        "b_e2": s * jax.random.normal(ks[17], (1, output_channels), jnp.float32),
    }
    return p


if __name__ == "__main__":
    B, Cin, Cout, H, Cc, T, L = 2, 4, 6, 32, 16, 16, 6

    key = jax.random.PRNGKey(0)
    kx, kc, kp = jax.random.split(key, 3)
    x = jax.random.normal(kx, (B, Cin, T), jnp.float32)
    condition = jax.random.normal(kc, (B, Cc, T), jnp.float32)
    params = init_params(kp, Cin, Cout, H, Cc, L)

    # tile_t=8 -> two time tiles, exercising the cross-tile causal carry.
    y = wavenet_forward(x, condition, params, tile_t=8)
    y = jax.block_until_ready(y)

    y_ref = jax.block_until_ready(wavenet_ref(x, condition, params))
    assert y.shape == (B, Cout, T), y.shape
    # bf16 matmul operands (f32 accumulation) -> relaxed tolerance vs f32 ref.
    assert jnp.allclose(y, y_ref, rtol=5e-2, atol=1e-2), float(jnp.max(jnp.abs(y - y_ref)))

    print("KERNEL_OK")
</pallas_src>

<mosaic_0001>
module attributes {stable_mosaic.version = 11 : i64} {
  func.func @wavenet_kernel(%arg0: i32, %arg1: i32, %arg2: memref<1x8x4xf32, #tpu.memory_space<vmem>>, %arg3: memref<1x8x16xf32, #tpu.memory_space<vmem>>, %arg4: memref<4x32xbf16, #tpu.memory_space<vmem>>, %arg5: memref<1x32xf32, #tpu.memory_space<vmem>>, %arg6: memref<6x80x64xbf16, #tpu.memory_space<vmem>>, %arg7: memref<6x1x64xf32, #tpu.memory_space<vmem>>, %arg8: memref<6x32x64xbf16, #tpu.memory_space<vmem>>, %arg9: memref<6x1x64xf32, #tpu.memory_space<vmem>>, %arg10: memref<32x32xbf16, #tpu.memory_space<vmem>>, %arg11: memref<1x32xf32, #tpu.memory_space<vmem>>, %arg12: memref<32x128xbf16, #tpu.memory_space<vmem>>, %arg13: memref<1x128xf32, #tpu.memory_space<vmem>>, %arg14: memref<1x8x128xf32, #tpu.memory_space<vmem>>, %arg15: memref<6x32x32xf32, #tpu.memory_space<vmem>>) attributes {dimension_semantics = [#tpu.dimension_semantics<parallel>, #tpu.dimension_semantics<arbitrary>], iteration_bounds = array<i64: 2, 2>, scalar_prefetch = 0 : i64, scratch_operands = 1 : i64, tpu.core_type = #tpu.core_type<tc>, window_params = [{transform_indices = @transform_0, window_bounds = array<i64: 1, 8, 4>}, {transform_indices = @transform_1, window_bounds = array<i64: 1, 8, 16>}, {pipeline_mode = #tpu.pipeline_mode<synchronous>, transform_indices = @transform_2, window_bounds = array<i64: 4, 32>}, {pipeline_mode = #tpu.pipeline_mode<synchronous>, transform_indices = @transform_3, window_bounds = array<i64: 1, 32>}, {pipeline_mode = #tpu.pipeline_mode<synchronous>, transform_indices = @transform_4, window_bounds = array<i64: 6, 80, 64>}, {pipeline_mode = #tpu.pipeline_mode<synchronous>, transform_indices = @transform_5, window_bounds = array<i64: 6, 1, 64>}, {pipeline_mode = #tpu.pipeline_mode<synchronous>, transform_indices = @transform_6, window_bounds = array<i64: 6, 32, 64>}, {pipeline_mode = #tpu.pipeline_mode<synchronous>, transform_indices = @transform_7, window_bounds = array<i64: 6, 1, 64>}, {pipeline_mode = #tpu.pipeline_mode<synchronous>, transform_indices = @transform_8, window_bounds = array<i64: 32, 32>}, {pipeline_mode = #tpu.pipeline_mode<synchronous>, transform_indices = @transform_9, window_bounds = array<i64: 1, 32>}, {pipeline_mode = #tpu.pipeline_mode<synchronous>, transform_indices = @transform_10, window_bounds = array<i64: 32, 128>}, {pipeline_mode = #tpu.pipeline_mode<synchronous>, transform_indices = @transform_11, window_bounds = array<i64: 1, 128>}, {transform_indices = @transform_12, window_bounds = array<i64: 1, 8, 128>}]} {
    %c0_i32 = arith.constant 0 : i32
    %0 = arith.cmpi eq, %arg1, %c0_i32 : i32
    %1 = arith.extui %0 : i1 to i32
    %c0_i32_0 = arith.constant 0 : i32
    %2 = arith.cmpi ne, %1, %c0_i32_0 : i32
    scf.if %2 {
      %cst_147 = arith.constant 0.000000e+00 : f32
      %266 = vector.broadcast %cst_147 : f32 to vector<6x32x32xf32>
      %c0_148 = arith.constant 0 : index
      %c0_149 = arith.constant 0 : index
      %c0_150 = arith.constant 0 : index
      %267 = vector.load %arg15[%c0_148, %c0_149, %c0_150] : memref<6x32x32xf32, #tpu.memory_space<vmem>>, vector<6x32x32xf32>
      tpu.vector_store %arg15[%c0_148, %c0_149, %c0_150], %266 {strides = array<i32>} : memref<6x32x32xf32, #tpu.memory_space<vmem>>, vector<6x32x32xf32>,
    } else {
    }
    %c0 = arith.constant 0 : index
    %c0_1 = arith.constant 0 : index
    %c0_2 = arith.constant 0 : index
    %3 = vector.load %arg2[%c0, %c0_1, %c0_2] : memref<1x8x4xf32, #tpu.memory_space<vmem>>, vector<1x8x4xf32>
    %4 = vector.shape_cast %3 : vector<1x8x4xf32> to vector<8x4xf32>
    %5 = arith.truncf %4 : vector<8x4xf32> to vector<8x4xbf16>
    %c0_3 = arith.constant 0 : index
    %c0_4 = arith.constant 0 : index
    %c0_5 = arith.constant 0 : index
    %6 = vector.load %arg3[%c0_3, %c0_4, %c0_5] : memref<1x8x16xf32, #tpu.memory_space<vmem>>, vector<1x8x16xf32>
    %7 = vector.shape_cast %6 : vector<1x8x16xf32> to vector<8x16xf32>
    %8 = arith.truncf %7 : vector<8x16xf32> to vector<8x16xbf16>
    %c0_6 = arith.constant 0 : index
    %c0_7 = arith.constant 0 : index
    %9 = vector.load %arg4[%c0_6, %c0_7] : memref<4x32xbf16, #tpu.memory_space<vmem>>, vector<4x32xbf16>
    %cst = arith.constant dense<0.000000e+00> : vector<8x32xf32>
    %10 = tpu.matmul %5, %9, %cst {dimension_numbers = #tpu.dot_dimension_numbers<[1], [0], [0], [1], [0, 0, 1, 1], [], []>} : vector<8x4xbf16>, vector<4x32xbf16>, vector<8x32xf32> -> vector<8x32xf32>
    %c0_8 = arith.constant 0 : index
    %c0_9 = arith.constant 0 : index
    %11 = vector.load %arg5[%c0_8, %c0_9] : memref<1x32xf32, #tpu.memory_space<vmem>>, vector<1x32xf32>
    %12 = vector.broadcast %11 : vector<1x32xf32> to vector<8x32xf32>
    %13 = arith.addf %10, %12 : vector<8x32xf32>
    %cst_10 = arith.constant 0.000000e+00 : f32
    %14 = vector.broadcast %cst_10 : f32 to vector<8x32xf32>
    %c0_11 = arith.constant 0 : index
    %c0_12 = arith.constant 0 : index
    %c0_13 = arith.constant 0 : index
    %15 = vector.load %arg15[%c0_11, %c0_12, %c0_13] : memref<6x32x32xf32, #tpu.memory_space<vmem>>, vector<1x32x32xf32>
    %16 = vector.shape_cast %15 : vector<1x32x32xf32> to vector<32x32xf32>
    %17 = tpu.concatenate %16, %13 in 0 : vector<32x32xf32>, vector<8x32xf32> -> vector<40x32xf32>
    %18 = vector.extract_strided_slice %17 {offsets = [8, 0], sizes = [32, 32], strides = [1, 1]} : vector<40x32xf32> to vector<32x32xf32>
    %c0_14 = arith.constant 0 : index
    %c0_15 = arith.constant 0 : index
    %c0_16 = arith.constant 0 : index
    %19 = vector.load %arg15[%c0_14, %c0_15, %c0_16] : memref<6x32x32xf32, #tpu.memory_space<vmem>>, vector<1x32x32xf32>
    %20 = vector.shape_cast %19 : vector<1x32x32xf32> to vector<32x32xf32>
    %21 = vector.shape_cast %18 : vector<32x32xf32> to vector<1x32x32xf32>
    tpu.vector_store %arg15[%c0_14, %c0_15, %c0_16], %21 {strides = array<i32>} : memref<6x32x32xf32, #tpu.memory_space<vmem>>, vector<1x32x32xf32>,
    %22 = vector.extract_strided_slice %17 {offsets = [31, 0], sizes = [8, 32], strides = [1, 1]} : vector<40x32xf32> to vector<8x32xf32>
    %23 = arith.truncf %22 : vector<8x32xf32> to vector<8x32xbf16>
    %24 = arith.truncf %13 : vector<8x32xf32> to vector<8x32xbf16>
    %25 = tpu.concatenate %23, %24, %8 in 1 : vector<8x32xbf16>, vector<8x32xbf16>, vector<8x16xbf16> -> vector<8x80xbf16>
    %c0_17 = arith.constant 0 : index
    %c0_18 = arith.constant 0 : index
    %c0_19 = arith.constant 0 : index
    %26 = vector.load %arg6[%c0_17, %c0_18, %c0_19] : memref<6x80x64xbf16, #tpu.memory_space<vmem>>, vector<1x80x64xbf16>
    %27 = vector.shape_cast %26 : vector<1x80x64xbf16> to vector<80x64xbf16>
    %cst_20 = arith.constant dense<0.000000e+00> : vector<8x64xf32>
    %28 = tpu.matmul %25, %27, %cst_20 {dimension_numbers = #tpu.dot_dimension_numbers<[1], [0], [0], [1], [0, 0, 1, 1], [], []>} : vector<8x80xbf16>, vector<80x64xbf16>, vector<8x64xf32> -> vector<8x64xf32>
    %c0_21 = arith.constant 0 : index
    %c0_22 = arith.constant 0 : index
    %c0_23 = arith.constant 0 : index
    %29 = vector.load %arg7[%c0_21, %c0_22, %c0_23] : memref<6x1x64xf32, #tpu.memory_space<vmem>>, vector<1x1x64xf32>
    %30 = vector.shape_cast %29 : vector<1x1x64xf32> to vector<1x64xf32>
    %31 = vector.broadcast %30 : vector<1x64xf32> to vector<8x64xf32>
    %32 = arith.addf %28, %31 : vector<8x64xf32>
    %33 = vector.extract_strided_slice %32 {offsets = [0, 0], sizes = [8, 32], strides = [1, 1]} : vector<8x64xf32> to vector<8x32xf32>
    %34 = math.tanh %33 : vector<8x32xf32>
    %35 = vector.extract_strided_slice %32 {offsets = [0, 32], sizes = [8, 32], strides = [1, 1]} : vector<8x64xf32> to vector<8x32xf32>
    %36 = arith.negf %35 : vector<8x32xf32>
    %37 = math.exp %36 : vector<8x32xf32>
    %cst_24 = arith.constant 1.000000e+00 : f32
    %38 = vector.broadcast %cst_24 : f32 to vector<8x32xf32>
    %39 = arith.addf %38, %37 : vector<8x32xf32>
    %40 = arith.divf %38, %39 : vector<8x32xf32>
    %41 = arith.mulf %34, %40 : vector<8x32xf32>
    %42 = arith.truncf %41 : vector<8x32xf32> to vector<8x32xbf16>
    %c0_25 = arith.constant 0 : index
    %c0_26 = arith.constant 0 : index
    %c0_27 = arith.constant 0 : index
    %43 = vector.load %arg8[%c0_25, %c0_26, %c0_27] : memref<6x32x64xbf16, #tpu.memory_space<vmem>>, vector<1x32x64xbf16>
    %44 = vector.shape_cast %43 : vector<1x32x64xbf16> to vector<32x64xbf16>
    %cst_28 = arith.constant dense<0.000000e+00> : vector<8x64xf32>
    %45 = tpu.matmul %42, %44, %cst_28 {dimension_numbers = #tpu.dot_dimension_numbers<[1], [0], [0], [1], [0, 0, 1, 1], [], []>} : vector<8x32xbf16>, vector<32x64xbf16>, vector<8x64xf32> -> vector<8x64xf32>
    %c0_29 = arith.constant 0 : index
    %c0_30 = arith.constant 0 : index
    %c0_31 = arith.constant 0 : index
    %46 = vector.load %arg9[%c0_29, %c0_30, %c0_31] : memref<6x1x64xf32, #tpu.memory_space<vmem>>, vector<1x1x64xf32>
    %47 = vector.shape_cast %46 : vector<1x1x64xf32> to vector<1x64xf32>
    %48 = vector.broadcast %47 : vector<1x64xf32> to vector<8x64xf32>
    %49 = arith.addf %45, %48 : vector<8x64xf32>
    %50 = vector.extract_strided_slice %49 {offsets = [0, 0], sizes = [8, 32], strides = [1, 1]} : vector<8x64xf32> to vector<8x32xf32>
    %51 = arith.addf %14, %50 : vector<8x32xf32>
    %52 = vector.extract_strided_slice %49 {offsets = [0, 32], sizes = [8, 32], strides = [1, 1]} : vector<8x64xf32> to vector<8x32xf32>
    %53 = arith.addf %13, %52 : vector<8x32xf32>
    %c1 = arith.constant 1 : index
    %c0_32 = arith.constant 0 : index
    %c0_33 = arith.constant 0 : index
    %54 = vector.load %arg15[%c1, %c0_32, %c0_33] : memref<6x32x32xf32, #tpu.memory_space<vmem>>, vector<1x32x32xf32>
    %55 = vector.shape_cast %54 : vector<1x32x32xf32> to vector<32x32xf32>
    %56 = tpu.concatenate %55, %53 in 0 : vector<32x32xf32>, vector<8x32xf32> -> vector<40x32xf32>
    %57 = vector.extract_strided_slice %56 {offsets = [8, 0], sizes = [32, 32], strides = [1, 1]} : vector<40x32xf32> to vector<32x32xf32>
    %c1_34 = arith.constant 1 : index
    %c0_35 = arith.constant 0 : index
    %c0_36 = arith.constant 0 : index
    %58 = vector.load %arg15[%c1_34, %c0_35, %c0_36] : memref<6x32x32xf32, #tpu.memory_space<vmem>>, vector<1x32x32xf32>
    %59 = vector.shape_cast %58 : vector<1x32x32xf32> to vector<32x32xf32>
    %60 = vector.shape_cast %57 : vector<32x32xf32> to vector<1x32x32xf32>
    tpu.vector_store %arg15[%c1_34, %c0_35, %c0_36], %60 {strides = array<i32>} : memref<6x32x32xf32, #tpu.memory_space<vmem>>, vector<1x32x32xf32>,
    %61 = vector.extract_strided_slice %56 {offsets = [30, 0], sizes = [8, 32], strides = [1, 1]} : vector<40x32xf32> to vector<8x32xf32>
    %62 = arith.truncf %61 : vector<8x32xf32> to vector<8x32xbf16>
    %63 = arith.truncf %53 : vector<8x32xf32> to vector<8x32xbf16>
    %64 = tpu.concatenate %62, %63, %8 in 1 : vector<8x32xbf16>, vector<8x32xbf16>, vector<8x16xbf16> -> vector<8x80xbf16>
    %c1_37 = arith.constant 1 : index
    %c0_38 = arith.constant 0 : index
    %c0_39 = arith.constant 0 : index
    %65 = vector.load %arg6[%c1_37, %c0_38, %c0_39] : memref<6x80x64xbf16, #tpu.memory_space<vmem>>, vector<1x80x64xbf16>
    %66 = vector.shape_cast %65 : vector<1x80x64xbf16> to vector<80x64xbf16>
    %cst_40 = arith.constant dense<0.000000e+00> : vector<8x64xf32>
    %67 = tpu.matmul %64, %66, %cst_40 {dimension_numbers = #tpu.dot_dimension_numbers<[1], [0], [0], [1], [0, 0, 1, 1], [], []>} : vector<8x80xbf16>, vector<80x64xbf16>, vector<8x64xf32> -> vector<8x64xf32>
    %c1_41 = arith.constant 1 : index
    %c0_42 = arith.constant 0 : index
    %c0_43 = arith.constant 0 : index
    %68 = vector.load %arg7[%c1_41, %c0_42, %c0_43] : memref<6x1x64xf32, #tpu.memory_space<vmem>>, vector<1x1x64xf32>
    %69 = vector.shape_cast %68 : vector<1x1x64xf32> to vector<1x64xf32>
    %70 = vector.broadcast %69 : vector<1x64xf32> to vector<8x64xf32>
    %71 = arith.addf %67, %70 : vector<8x64xf32>
    %72 = vector.extract_strided_slice %71 {offsets = [0, 0], sizes = [8, 32], strides = [1, 1]} : vector<8x64xf32> to vector<8x32xf32>
    %73 = math.tanh %72 : vector<8x32xf32>
    %74 = vector.extract_strided_slice %71 {offsets = [0, 32], sizes = [8, 32], strides = [1, 1]} : vector<8x64xf32> to vector<8x32xf32>
    %75 = arith.negf %74 : vector<8x32xf32>
    %76 = math.exp %75 : vector<8x32xf32>
    %cst_44 = arith.constant 1.000000e+00 : f32
    %77 = vector.broadcast %cst_44 : f32 to vector<8x32xf32>
    %78 = arith.addf %77, %76 : vector<8x32xf32>
    %79 = arith.divf %77, %78 : vector<8x32xf32>
    %80 = arith.mulf %73, %79 : vector<8x32xf32>
    %81 = arith.truncf %80 : vector<8x32xf32> to vector<8x32xbf16>
    %c1_45 = arith.constant 1 : index
    %c0_46 = arith.constant 0 : index
    %c0_47 = arith.constant 0 : index
    %82 = vector.load %arg8[%c1_45, %c0_46, %c0_47] : memref<6x32x64xbf16, #tpu.memory_space<vmem>>, vector<1x32x64xbf16>
    %83 = vector.shape_cast %82 : vector<1x32x64xbf16> to vector<32x64xbf16>
    %cst_48 = arith.constant dense<0.000000e+00> : vector<8x64xf32>
    %84 = tpu.matmul %81, %83, %cst_48 {dimension_numbers = #tpu.dot_dimension_numbers<[1], [0], [0], [1], [0, 0, 1, 1], [], []>} : vector<8x32xbf16>, vector<32x64xbf16>, vector<8x64xf32> -> vector<8x64xf32>
    %c1_49 = arith.constant 1 : index
    %c0_50 = arith.constant 0 : index
    %c0_51 = arith.constant 0 : index
    %85 = vector.load %arg9[%c1_49, %c0_50, %c0_51] : memref<6x1x64xf32, #tpu.memory_space<vmem>>, vector<1x1x64xf32>
    %86 = vector.shape_cast %85 : vector<1x1x64xf32> to vector<1x64xf32>
    %87 = vector.broadcast %86 : vector<1x64xf32> to vector<8x64xf32>
    %88 = arith.addf %84, %87 : vector<8x64xf32>
    %89 = vector.extract_strided_slice %88 {offsets = [0, 0], sizes = [8, 32], strides = [1, 1]} : vector<8x64xf32> to vector<8x32xf32>
    %90 = arith.addf %51, %89 : vector<8x32xf32>
    %91 = vector.extract_strided_slice %88 {offsets = [0, 32], sizes = [8, 32], strides = [1, 1]} : vector<8x64xf32> to vector<8x32xf32>
    %92 = arith.addf %53, %91 : vector<8x32xf32>
    %c2 = arith.constant 2 : index
    %c0_52 = arith.constant 0 : index
    %c0_53 = arith.constant 0 : index
    %93 = vector.load %arg15[%c2, %c0_52, %c0_53] : memref<6x32x32xf32, #tpu.memory_space<vmem>>, vector<1x32x32xf32>
    %94 = vector.shape_cast %93 : vector<1x32x32xf32> to vector<32x32xf32>
    %95 = tpu.concatenate %94, %92 in 0 : vector<32x32xf32>, vector<8x32xf32> -> vector<40x32xf32>
    %96 = vector.extract_strided_slice %95 {offsets = [8, 0], sizes = [32, 32], strides = [1, 1]} : vector<40x32xf32> to vector<32x32xf32>
    %c2_54 = arith.constant 2 : index
    %c0_55 = arith.constant 0 : index
    %c0_56 = arith.constant 0 : index
    %97 = vector.load %arg15[%c2_54, %c0_55, %c0_56] : memref<6x32x32xf32, #tpu.memory_space<vmem>>, vector<1x32x32xf32>
    %98 = vector.shape_cast %97 : vector<1x32x32xf32> to vector<32x32xf32>
    %99 = vector.shape_cast %96 : vector<32x32xf32> to vector<1x32x32xf32>
    tpu.vector_store %arg15[%c2_54, %c0_55, %c0_56], %99 {strides = array<i32>} : memref<6x32x32xf32, #tpu.memory_space<vmem>>, vector<1x32x32xf32>,
    %100 = vector.extract_strided_slice %95 {offsets = [28, 0], sizes = [8, 32], strides = [1, 1]} : vector<40x32xf32> to vector<8x32xf32>
    %101 = arith.truncf %100 : vector<8x32xf32> to vector<8x32xbf16>
    %102 = arith.truncf %92 : vector<8x32xf32> to vector<8x32xbf16>
    %103 = tpu.concatenate %101, %102, %8 in 1 : vector<8x32xbf16>, vector<8x32xbf16>, vector<8x16xbf16> -> vector<8x80xbf16>
    %c2_57 = arith.constant 2 : index
    %c0_58 = arith.constant 0 : index
    %c0_59 = arith.constant 0 : index
    %104 = vector.load %arg6[%c2_57, %c0_58, %c0_59] : memref<6x80x64xbf16, #tpu.memory_space<vmem>>, vector<1x80x64xbf16>
    %105 = vector.shape_cast %104 : vector<1x80x64xbf16> to vector<80x64xbf16>
    %cst_60 = arith.constant dense<0.000000e+00> : vector<8x64xf32>
    %106 = tpu.matmul %103, %105, %cst_60 {dimension_numbers = #tpu.dot_dimension_numbers<[1], [0], [0], [1], [0, 0, 1, 1], [], []>} : vector<8x80xbf16>, vector<80x64xbf16>, vector<8x64xf32> -> vector<8x64xf32>
    %c2_61 = arith.constant 2 : index
    %c0_62 = arith.constant 0 : index
    %c0_63 = arith.constant 0 : index
    %107 = vector.load %arg7[%c2_61, %c0_62, %c0_63] : memref<6x1x64xf32, #tpu.memory_space<vmem>>, vector<1x1x64xf32>
    %108 = vector.shape_cast %107 : vector<1x1x64xf32> to vector<1x64xf32>
    %109 = vector.broadcast %108 : vector<1x64xf32> to vector<8x64xf32>
    %110 = arith.addf %106, %109 : vector<8x64xf32>
    %111 = vector.extract_strided_slice %110 {offsets = [0, 0], sizes = [8, 32], strides = [1, 1]} : vector<8x64xf32> to vector<8x32xf32>
    %112 = math.tanh %111 : vector<8x32xf32>
    %113 = vector.extract_strided_slice %110 {offsets = [0, 32], sizes = [8, 32], strides = [1, 1]} : vector<8x64xf32> to vector<8x32xf32>
    %114 = arith.negf %113 : vector<8x32xf32>
    %115 = math.exp %114 : vector<8x32xf32>
    %cst_64 = arith.constant 1.000000e+00 : f32
    %116 = vector.broadcast %cst_64 : f32 to vector<8x32xf32>
    %117 = arith.addf %116, %115 : vector<8x32xf32>
    %118 = arith.divf %116, %117 : vector<8x32xf32>
    %119 = arith.mulf %112, %118 : vector<8x32xf32>
    %120 = arith.truncf %119 : vector<8x32xf32> to vector<8x32xbf16>
    %c2_65 = arith.constant 2 : index
    %c0_66 = arith.constant 0 : index
    %c0_67 = arith.constant 0 : index
    %121 = vector.load %arg8[%c2_65, %c0_66, %c0_67] : memref<6x32x64xbf16, #tpu.memory_space<vmem>>, vector<1x32x64xbf16>
    %122 = vector.shape_cast %121 : vector<1x32x64xbf16> to vector<32x64xbf16>
    %cst_68 = arith.constant dense<0.000000e+00> : vector<8x64xf32>
    %123 = tpu.matmul %120, %122, %cst_68 {dimension_numbers = #tpu.dot_dimension_numbers<[1], [0], [0], [1], [0, 0, 1, 1], [], []>} : vector<8x32xbf16>, vector<32x64xbf16>, vector<8x64xf32> -> vector<8x64xf32>
    %c2_69 = arith.constant 2 : index
    %c0_70 = arith.constant 0 : index
    %c0_71 = arith.constant 0 : index
    %124 = vector.load %arg9[%c2_69, %c0_70, %c0_71] : memref<6x1x64xf32, #tpu.memory_space<vmem>>, vector<1x1x64xf32>
    %125 = vector.shape_cast %124 : vector<1x1x64xf32> to vector<1x64xf32>
    %126 = vector.broadcast %125 : vector<1x64xf32> to vector<8x64xf32>
    %127 = arith.addf %123, %126 : vector<8x64xf32>
    %128 = vector.extract_strided_slice %127 {offsets = [0, 0], sizes = [8, 32], strides = [1, 1]} : vector<8x64xf32> to vector<8x32xf32>
    %129 = arith.addf %90, %128 : vector<8x32xf32>
    %130 = vector.extract_strided_slice %127 {offsets = [0, 32], sizes = [8, 32], strides = [1, 1]} : vector<8x64xf32> to vector<8x32xf32>
    %131 = arith.addf %92, %130 : vector<8x32xf32>
    %c3 = arith.constant 3 : index
    %c0_72 = arith.constant 0 : index
    %c0_73 = arith.constant 0 : index
    %132 = vector.load %arg15[%c3, %c0_72, %c0_73] : memref<6x32x32xf32, #tpu.memory_space<vmem>>, vector<1x32x32xf32>
    %133 = vector.shape_cast %132 : vector<1x32x32xf32> to vector<32x32xf32>
    %134 = tpu.concatenate %133, %131 in 0 : vector<32x32xf32>, vector<8x32xf32> -> vector<40x32xf32>
    %135 = vector.extract_strided_slice %134 {offsets = [8, 0], sizes = [32, 32], strides = [1, 1]} : vector<40x32xf32> to vector<32x32xf32>
    %c3_74 = arith.constant 3 : index
    %c0_75 = arith.constant 0 : index
    %c0_76 = arith.constant 0 : index
    %136 = vector.load %arg15[%c3_74, %c0_75, %c0_76] : memref<6x32x32xf32, #tpu.memory_space<vmem>>, vector<1x32x32xf32>
    %137 = vector.shape_cast %136 : vector<1x32x32xf32> to vector<32x32xf32>
    %138 = vector.shape_cast %135 : vector<32x32xf32> to vector<1x32x32xf32>
    tpu.vector_store %arg15[%c3_74, %c0_75, %c0_76], %138 {strides = array<i32>} : memref<6x32x32xf32, #tpu.memory_space<vmem>>, vector<1x32x32xf32>,
    %139 = vector.extract_strided_slice %134 {offsets = [24, 0], sizes = [8, 32], strides = [1, 1]} : vector<40x32xf32> to vector<8x32xf32>
    %140 = arith.truncf %139 : vector<8x32xf32> to vector<8x32xbf16>
    %141 = arith.truncf %131 : vector<8x32xf32> to vector<8x32xbf16>
    %142 = tpu.concatenate %140, %141, %8 in 1 : vector<8x32xbf16>, vector<8x32xbf16>, vector<8x16xbf16> -> vector<8x80xbf16>
    %c3_77 = arith.constant 3 : index
    %c0_78 = arith.constant 0 : index
    %c0_79 = arith.constant 0 : index
    %143 = vector.load %arg6[%c3_77, %c0_78, %c0_79] : memref<6x80x64xbf16, #tpu.memory_space<vmem>>, vector<1x80x64xbf16>
    %144 = vector.shape_cast %143 : vector<1x80x64xbf16> to vector<80x64xbf16>
    %cst_80 = arith.constant dense<0.000000e+00> : vector<8x64xf32>
    %145 = tpu.matmul %142, %144, %cst_80 {dimension_numbers = #tpu.dot_dimension_numbers<[1], [0], [0], [1], [0, 0, 1, 1], [], []>} : vector<8x80xbf16>, vector<80x64xbf16>, vector<8x64xf32> -> vector<8x64xf32>
    %c3_81 = arith.constant 3 : index
    %c0_82 = arith.constant 0 : index
    %c0_83 = arith.constant 0 : index
    %146 = vector.load %arg7[%c3_81, %c0_82, %c0_83] : memref<6x1x64xf32, #tpu.memory_space<vmem>>, vector<1x1x64xf32>
    %147 = vector.shape_cast %146 : vector<1x1x64xf32> to vector<1x64xf32>
    %148 = vector.broadcast %147 : vector<1x64xf32> to vector<8x64xf32>
    %149 = arith.addf %145, %148 : vector<8x64xf32>
    %150 = vector.extract_strided_slice %149 {offsets = [0, 0], sizes = [8, 32], strides = [1, 1]} : vector<8x64xf32> to vector<8x32xf32>
    %151 = math.tanh %150 : vector<8x32xf32>
    %152 = vector.extract_strided_slice %149 {offsets = [0, 32], sizes = [8, 32], strides = [1, 1]} : vector<8x64xf32> to vector<8x32xf32>
    %153 = arith.negf %152 : vector<8x32xf32>
    %154 = math.exp %153 : vector<8x32xf32>
    %cst_84 = arith.constant 1.000000e+00 : f32
    %155 = vector.broadcast %cst_84 : f32 to vector<8x32xf32>
    %156 = arith.addf %155, %154 : vector<8x32xf32>
    %157 = arith.divf %155, %156 : vector<8x32xf32>
    %158 = arith.mulf %151, %157 : vector<8x32xf32>
    %159 = arith.truncf %158 : vector<8x32xf32> to vector<8x32xbf16>
    %c3_85 = arith.constant 3 : index
    %c0_86 = arith.constant 0 : index
    %c0_87 = arith.constant 0 : index
    %160 = vector.load %arg8[%c3_85, %c0_86, %c0_87] : memref<6x32x64xbf16, #tpu.memory_space<vmem>>, vector<1x32x64xbf16>
    %161 = vector.shape_cast %160 : vector<1x32x64xbf16> to vector<32x64xbf16>
    %cst_88 = arith.constant dense<0.000000e+00> : vector<8x64xf32>
    %162 = tpu.matmul %159, %161, %cst_88 {dimension_numbers = #tpu.dot_dimension_numbers<[1], [0], [0], [1], [0, 0, 1, 1], [], []>} : vector<8x32xbf16>, vector<32x64xbf16>, vector<8x64xf32> -> vector<8x64xf32>
    %c3_89 = arith.constant 3 : index
    %c0_90 = arith.constant 0 : index
    %c0_91 = arith.constant 0 : index
    %163 = vector.load %arg9[%c3_89, %c0_90, %c0_91] : memref<6x1x64xf32, #tpu.memory_space<vmem>>, vector<1x1x64xf32>
    %164 = vector.shape_cast %163 : vector<1x1x64xf32> to vector<1x64xf32>
    %165 = vector.broadcast %164 : vector<1x64xf32> to vector<8x64xf32>
    %166 = arith.addf %162, %165 : vector<8x64xf32>
    %167 = vector.extract_strided_slice %166 {offsets = [0, 0], sizes = [8, 32], strides = [1, 1]} : vector<8x64xf32> to vector<8x32xf32>
    %168 = arith.addf %129, %167 : vector<8x32xf32>
    %169 = vector.extract_strided_slice %166 {offsets = [0, 32], sizes = [8, 32], strides = [1, 1]} : vector<8x64xf32> to vector<8x32xf32>
    %170 = arith.addf %131, %169 : vector<8x32xf32>
    %c4 = arith.constant 4 : index
    %c0_92 = arith.constant 0 : index
    %c0_93 = arith.constant 0 : index
    %171 = vector.load %arg15[%c4, %c0_92, %c0_93] : memref<6x32x32xf32, #tpu.memory_space<vmem>>, vector<1x32x32xf32>
    %172 = vector.shape_cast %171 : vector<1x32x32xf32> to vector<32x32xf32>
    %173 = tpu.concatenate %172, %170 in 0 : vector<32x32xf32>, vector<8x32xf32> -> vector<40x32xf32>
    %174 = vector.extract_strided_slice %173 {offsets = [8, 0], sizes = [32, 32], strides = [1, 1]} : vector<40x32xf32> to vector<32x32xf32>
    %c4_94 = arith.constant 4 : index
    %c0_95 = arith.constant 0 : index
    %c0_96 = arith.constant 0 : index
    %175 = vector.load %arg15[%c4_94, %c0_95, %c0_96] : memref<6x32x32xf32, #tpu.memory_space<vmem>>, vector<1x32x32xf32>
    %176 = vector.shape_cast %175 : vector<1x32x32xf32> to vector<32x32xf32>
    %177 = vector.shape_cast %174 : vector<32x32xf32> to vector<1x32x32xf32>
    tpu.vector_store %arg15[%c4_94, %c0_95, %c0_96], %177 {strides = array<i32>} : memref<6x32x32xf32, #tpu.memory_space<vmem>>, vector<1x32x32xf32>,
    %178 = vector.extract_strided_slice %173 {offsets = [16, 0], sizes = [8, 32], strides = [1, 1]} : vector<40x32xf32> to vector<8x32xf32>
    %179 = arith.truncf %178 : vector<8x32xf32> to vector<8x32xbf16>
    %180 = arith.truncf %170 : vector<8x32xf32> to vector<8x32xbf16>
    %181 = tpu.concatenate %179, %180, %8 in 1 : vector<8x32xbf16>, vector<8x32xbf16>, vector<8x16xbf16> -> vector<8x80xbf16>
    %c4_97 = arith.constant 4 : index
    %c0_98 = arith.constant 0 : index
    %c0_99 = arith.constant 0 : index
    %182 = vector.load %arg6[%c4_97, %c0_98, %c0_99] : memref<6x80x64xbf16, #tpu.memory_space<vmem>>, vector<1x80x64xbf16>
    %183 = vector.shape_cast %182 : vector<1x80x64xbf16> to vector<80x64xbf16>
    %cst_100 = arith.constant dense<0.000000e+00> : vector<8x64xf32>
    %184 = tpu.matmul %181, %183, %cst_100 {dimension_numbers = #tpu.dot_dimension_numbers<[1], [0], [0], [1], [0, 0, 1, 1], [], []>} : vector<8x80xbf16>, vector<80x64xbf16>, vector<8x64xf32> -> vector<8x64xf32>
    %c4_101 = arith.constant 4 : index
    %c0_102 = arith.constant 0 : index
    %c0_103 = arith.constant 0 : index
    %185 = vector.load %arg7[%c4_101, %c0_102, %c0_103] : memref<6x1x64xf32, #tpu.memory_space<vmem>>, vector<1x1x64xf32>
    %186 = vector.shape_cast %185 : vector<1x1x64xf32> to vector<1x64xf32>
    %187 = vector.broadcast %186 : vector<1x64xf32> to vector<8x64xf32>
    %188 = arith.addf %184, %187 : vector<8x64xf32>
    %189 = vector.extract_strided_slice %188 {offsets = [0, 0], sizes = [8, 32], strides = [1, 1]} : vector<8x64xf32> to vector<8x32xf32>
    %190 = math.tanh %189 : vector<8x32xf32>
    %191 = vector.extract_strided_slice %188 {offsets = [0, 32], sizes = [8, 32], strides = [1, 1]} : vector<8x64xf32> to vector<8x32xf32>
    %192 = arith.negf %191 : vector<8x32xf32>
    %193 = math.exp %192 : vector<8x32xf32>
    %cst_104 = arith.constant 1.000000e+00 : f32
    %194 = vector.broadcast %cst_104 : f32 to vector<8x32xf32>
    %195 = arith.addf %194, %193 : vector<8x32xf32>
    %196 = arith.divf %194, %195 : vector<8x32xf32>
    %197 = arith.mulf %190, %196 : vector<8x32xf32>
    %198 = arith.truncf %197 : vector<8x32xf32> to vector<8x32xbf16>
    %c4_105 = arith.constant 4 : index
    %c0_106 = arith.constant 0 : index
    %c0_107 = arith.constant 0 : index
    %199 = vector.load %arg8[%c4_105, %c0_106, %c0_107] : memref<6x32x64xbf16, #tpu.memory_space<vmem>>, vector<1x32x64xbf16>
    %200 = vector.shape_cast %199 : vector<1x32x64xbf16> to vector<32x64xbf16>
    %cst_108 = arith.constant dense<0.000000e+00> : vector<8x64xf32>
    %201 = tpu.matmul %198, %200, %cst_108 {dimension_numbers = #tpu.dot_dimension_numbers<[1], [0], [0], [1], [0, 0, 1, 1], [], []>} : vector<8x32xbf16>, vector<32x64xbf16>, vector<8x64xf32> -> vector<8x64xf32>
    %c4_109 = arith.constant 4 : index
    %c0_110 = arith.constant 0 : index
    %c0_111 = arith.constant 0 : index
    %202 = vector.load %arg9[%c4_109, %c0_110, %c0_111] : memref<6x1x64xf32, #tpu.memory_space<vmem>>, vector<1x1x64xf32>
    %203 = vector.shape_cast %202 : vector<1x1x64xf32> to vector<1x64xf32>
    %204 = vector.broadcast %203 : vector<1x64xf32> to vector<8x64xf32>
    %205 = arith.addf %201, %204 : vector<8x64xf32>
    %206 = vector.extract_strided_slice %205 {offsets = [0, 0], sizes = [8, 32], strides = [1, 1]} : vector<8x64xf32> to vector<8x32xf32>
    %207 = arith.addf %168, %206 : vector<8x32xf32>
    %208 = vector.extract_strided_slice %205 {offsets = [0, 32], sizes = [8, 32], strides = [1, 1]} : vector<8x64xf32> to vector<8x32xf32>
    %209 = arith.addf %170, %208 : vector<8x32xf32>
    %c5 = arith.constant 5 : index
    %c0_112 = arith.constant 0 : index
    %c0_113 = arith.constant 0 : index
    %210 = vector.load %arg15[%c5, %c0_112, %c0_113] : memref<6x32x32xf32, #tpu.memory_space<vmem>>, vector<1x32x32xf32>
    %211 = vector.shape_cast %210 : vector<1x32x32xf32> to vector<32x32xf32>
    %212 = tpu.concatenate %211, %209 in 0 : vector<32x32xf32>, vector<8x32xf32> -> vector<40x32xf32>
    %213 = vector.extract_strided_slice %212 {offsets = [8, 0], sizes = [32, 32], strides = [1, 1]} : vector<40x32xf32> to vector<32x32xf32>
    %c5_114 = arith.constant 5 : index
    %c0_115 = arith.constant 0 : index
    %c0_116 = arith.constant 0 : index
    %214 = vector.load %arg15[%c5_114, %c0_115, %c0_116] : memref<6x32x32xf32, #tpu.memory_space<vmem>>, vector<1x32x32xf32>
    %215 = vector.shape_cast %214 : vector<1x32x32xf32> to vector<32x32xf32>
    %216 = vector.shape_cast %213 : vector<32x32xf32> to vector<1x32x32xf32>
    tpu.vector_store %arg15[%c5_114, %c0_115, %c0_116], %216 {strides = array<i32>} : memref<6x32x32xf32, #tpu.memory_space<vmem>>, vector<1x32x32xf32>,
    %217 = vector.extract_strided_slice %212 {offsets = [0, 0], sizes = [8, 32], strides = [1, 1]} : vector<40x32xf32> to vector<8x32xf32>
    %218 = arith.truncf %217 : vector<8x32xf32> to vector<8x32xbf16>
    %219 = arith.truncf %209 : vector<8x32xf32> to vector<8x32xbf16>
    %220 = tpu.concatenate %218, %219, %8 in 1 : vector<8x32xbf16>, vector<8x32xbf16>, vector<8x16xbf16> -> vector<8x80xbf16>
    %c5_117 = arith.constant 5 : index
    %c0_118 = arith.constant 0 : index
    %c0_119 = arith.constant 0 : index
    %221 = vector.load %arg6[%c5_117, %c0_118, %c0_119] : memref<6x80x64xbf16, #tpu.memory_space<vmem>>, vector<1x80x64xbf16>
    %222 = vector.shape_cast %221 : vector<1x80x64xbf16> to vector<80x64xbf16>
    %cst_120 = arith.constant dense<0.000000e+00> : vector<8x64xf32>
    %223 = tpu.matmul %220, %222, %cst_120 {dimension_numbers = #tpu.dot_dimension_numbers<[1], [0], [0], [1], [0, 0, 1, 1], [], []>} : vector<8x80xbf16>, vector<80x64xbf16>, vector<8x64xf32> -> vector<8x64xf32>
    %c5_121 = arith.constant 5 : index
    %c0_122 = arith.constant 0 : index
    %c0_123 = arith.constant 0 : index
    %224 = vector.load %arg7[%c5_121, %c0_122, %c0_123] : memref<6x1x64xf32, #tpu.memory_space<vmem>>, vector<1x1x64xf32>
    %225 = vector.shape_cast %224 : vector<1x1x64xf32> to vector<1x64xf32>
    %226 = vector.broadcast %225 : vector<1x64xf32> to vector<8x64xf32>
    %227 = arith.addf %223, %226 : vector<8x64xf32>
    %228 = vector.extract_strided_slice %227 {offsets = [0, 0], sizes = [8, 32], strides = [1, 1]} : vector<8x64xf32> to vector<8x32xf32>
    %229 = math.tanh %228 : vector<8x32xf32>
    %230 = vector.extract_strided_slice %227 {offsets = [0, 32], sizes = [8, 32], strides = [1, 1]} : vector<8x64xf32> to vector<8x32xf32>
    %231 = arith.negf %230 : vector<8x32xf32>
    %232 = math.exp %231 : vector<8x32xf32>
    %cst_124 = arith.constant 1.000000e+00 : f32
    %233 = vector.broadcast %cst_124 : f32 to vector<8x32xf32>
    %234 = arith.addf %233, %232 : vector<8x32xf32>
    %235 = arith.divf %233, %234 : vector<8x32xf32>
    %236 = arith.mulf %229, %235 : vector<8x32xf32>
    %237 = arith.truncf %236 : vector<8x32xf32> to vector<8x32xbf16>
    %c5_125 = arith.constant 5 : index
    %c0_126 = arith.constant 0 : index
    %c0_127 = arith.constant 0 : index
    %238 = vector.load %arg8[%c5_125, %c0_126, %c0_127] : memref<6x32x64xbf16, #tpu.memory_space<vmem>>, vector<1x32x64xbf16>
    %239 = vector.shape_cast %238 : vector<1x32x64xbf16> to vector<32x64xbf16>
    %cst_128 = arith.constant dense<0.000000e+00> : vector<8x64xf32>
    %240 = tpu.matmul %237, %239, %cst_128 {dimension_numbers = #tpu.dot_dimension_numbers<[1], [0], [0], [1], [0, 0, 1, 1], [], []>} : vector<8x32xbf16>, vector<32x64xbf16>, vector<8x64xf32> -> vector<8x64xf32>
    %c5_129 = arith.constant 5 : index
    %c0_130 = arith.constant 0 : index
    %c0_131 = arith.constant 0 : index
    %241 = vector.load %arg9[%c5_129, %c0_130, %c0_131] : memref<6x1x64xf32, #tpu.memory_space<vmem>>, vector<1x1x64xf32>
    %242 = vector.shape_cast %241 : vector<1x1x64xf32> to vector<1x64xf32>
    %243 = vector.broadcast %242 : vector<1x64xf32> to vector<8x64xf32>
    %244 = arith.addf %240, %243 : vector<8x64xf32>
    %245 = vector.extract_strided_slice %244 {offsets = [0, 0], sizes = [8, 32], strides = [1, 1]} : vector<8x64xf32> to vector<8x32xf32>
    %246 = arith.addf %207, %245 : vector<8x32xf32>
    %cst_132 = arith.constant 0.000000e+00 : f32
    %247 = vector.broadcast %cst_132 : f32 to vector<8x32xf32>
    %248 = arith.maximumf %246, %247 : vector<8x32xf32>
    %249 = arith.truncf %248 : vector<8x32xf32> to vector<8x32xbf16>
    %c0_133 = arith.constant 0 : index
    %c0_134 = arith.constant 0 : index
    %250 = vector.load %arg10[%c0_133, %c0_134] : memref<32x32xbf16, #tpu.memory_space<vmem>>, vector<32x32xbf16>
    %cst_135 = arith.constant dense<0.000000e+00> : vector<8x32xf32>
    %251 = tpu.matmul %249, %250, %cst_135 {dimension_numbers = #tpu.dot_dimension_numbers<[1], [0], [0], [1], [0, 0, 1, 1], [], []>} : vector<8x32xbf16>, vector<32x32xbf16>, vector<8x32xf32> -> vector<8x32xf32>
    %c0_136 = arith.constant 0 : index
    %c0_137 = arith.constant 0 : index
    %252 = vector.load %arg11[%c0_136, %c0_137] : memref<1x32xf32, #tpu.memory_space<vmem>>, vector<1x32xf32>
    %253 = vector.broadcast %252 : vector<1x32xf32> to vector<8x32xf32>
    %254 = arith.addf %251, %253 : vector<8x32xf32>
    %cst_138 = arith.constant 0.000000e+00 : f32
    %255 = vector.broadcast %cst_138 : f32 to vector<8x32xf32>
    %256 = arith.maximumf %254, %255 : vector<8x32xf32>
    %257 = arith.truncf %256 : vector<8x32xf32> to vector<8x32xbf16>
    %c0_139 = arith.constant 0 : index
    %c0_140 = arith.constant 0 : index
    %258 = vector.load %arg12[%c0_139, %c0_140] : memref<32x128xbf16, #tpu.memory_space<vmem>>, vector<32x128xbf16>
    %cst_141 = arith.constant dense<0.000000e+00> : vector<8x128xf32>
    %259 = tpu.matmul %257, %258, %cst_141 {dimension_numbers = #tpu.dot_dimension_numbers<[1], [0], [0], [1], [0, 0, 1, 1], [], []>} : vector<8x32xbf16>, vector<32x128xbf16>, vector<8x128xf32> -> vector<8x128xf32>
    %c0_142 = arith.constant 0 : index
    %c0_143 = arith.constant 0 : index
    %260 = vector.load %arg13[%c0_142, %c0_143] : memref<1x128xf32, #tpu.memory_space<vmem>>, vector<1x128xf32>
    %261 = vector.broadcast %260 : vector<1x128xf32> to vector<8x128xf32>
    %262 = arith.addf %259, %261 : vector<8x128xf32>
    %c0_144 = arith.constant 0 : index
    %c0_145 = arith.constant 0 : index
    %c0_146 = arith.constant 0 : index
    %263 = vector.load %arg14[%c0_144, %c0_145, %c0_146] : memref<1x8x128xf32, #tpu.memory_space<vmem>>, vector<1x8x128xf32>
    %264 = vector.shape_cast %263 : vector<1x8x128xf32> to vector<8x128xf32>
    %265 = vector.shape_cast %262 : vector<8x128xf32> to vector<1x8x128xf32>
    tpu.vector_store %arg14[%c0_144, %c0_145, %c0_146], %265 {strides = array<i32>} : memref<1x8x128xf32, #tpu.memory_space<vmem>>, vector<1x8x128xf32>,
    return
  }
  func.func @transform_0(%arg0: i32, %arg1: i32) -> (i32, i32, i32) {
    %c0_i32 = arith.constant 0 : i32
    %c0_i32_0 = arith.constant 0 : i32
    return %arg0, %arg1, %c0_i32 : i32, i32, i32
  }
  func.func @transform_1(%arg0: i32, %arg1: i32) -> (i32, i32, i32) {
    %c0_i32 = arith.constant 0 : i32
    %c0_i32_0 = arith.constant 0 : i32
    return %arg0, %arg1, %c0_i32 : i32, i32, i32
  }
  func.func @transform_2(%arg0: i32, %arg1: i32) -> (i32, i32) {
    %c0_i32 = arith.constant 0 : i32
    %c0_i32_0 = arith.constant 0 : i32
    %c0_i32_1 = arith.constant 0 : i32
    return %c0_i32, %c0_i32_0 : i32, i32
  }
  func.func @transform_3(%arg0: i32, %arg1: i32) -> (i32, i32) {
    %c0_i32 = arith.constant 0 : i32
    %c0_i32_0 = arith.constant 0 : i32
    %c0_i32_1 = arith.constant 0 : i32
    return %c0_i32, %c0_i32_0 : i32, i32
  }
  func.func @transform_4(%arg0: i32, %arg1: i32) -> (i32, i32, i32) {
    %c0_i32 = arith.constant 0 : i32
    %c0_i32_0 = arith.constant 0 : i32
    %c0_i32_1 = arith.constant 0 : i32
    %c0_i32_2 = arith.constant 0 : i32
    return %c0_i32, %c0_i32_0, %c0_i32_1 : i32, i32, i32
  }
  func.func @transform_5(%arg0: i32, %arg1: i32) -> (i32, i32, i32) {
    %c0_i32 = arith.constant 0 : i32
    %c0_i32_0 = arith.constant 0 : i32
    %c0_i32_1 = arith.constant 0 : i32
    %c0_i32_2 = arith.constant 0 : i32
    return %c0_i32, %c0_i32_0, %c0_i32_1 : i32, i32, i32
  }
  func.func @transform_6(%arg0: i32, %arg1: i32) -> (i32, i32, i32) {
    %c0_i32 = arith.constant 0 : i32
    %c0_i32_0 = arith.constant 0 : i32
    %c0_i32_1 = arith.constant 0 : i32
    %c0_i32_2 = arith.constant 0 : i32
    return %c0_i32, %c0_i32_0, %c0_i32_1 : i32, i32, i32
  }
  func.func @transform_7(%arg0: i32, %arg1: i32) -> (i32, i32, i32) {
    %c0_i32 = arith.constant 0 : i32
    %c0_i32_0 = arith.constant 0 : i32
    %c0_i32_1 = arith.constant 0 : i32
    %c0_i32_2 = arith.constant 0 : i32
    return %c0_i32, %c0_i32_0, %c0_i32_1 : i32, i32, i32
  }
  func.func @transform_8(%arg0: i32, %arg1: i32) -> (i32, i32) {
    %c0_i32 = arith.constant 0 : i32
    %c0_i32_0 = arith.constant 0 : i32
    %c0_i32_1 = arith.constant 0 : i32
    return %c0_i32, %c0_i32_0 : i32, i32
  }
  func.func @transform_9(%arg0: i32, %arg1: i32) -> (i32, i32) {
    %c0_i32 = arith.constant 0 : i32
    %c0_i32_0 = arith.constant 0 : i32
    %c0_i32_1 = arith.constant 0 : i32
    return %c0_i32, %c0_i32_0 : i32, i32
  }
  func.func @transform_10(%arg0: i32, %arg1: i32) -> (i32, i32) {
    %c0_i32 = arith.constant 0 : i32
    %c0_i32_0 = arith.constant 0 : i32
    %c0_i32_1 = arith.constant 0 : i32
    return %c0_i32, %c0_i32_0 : i32, i32
  }
  func.func @transform_11(%arg0: i32, %arg1: i32) -> (i32, i32) {
    %c0_i32 = arith.constant 0 : i32
    %c0_i32_0 = arith.constant 0 : i32
    %c0_i32_1 = arith.constant 0 : i32
    return %c0_i32, %c0_i32_0 : i32, i32
  }
  func.func @transform_12(%arg0: i32, %arg1: i32) -> (i32, i32, i32) {
    %c0_i32 = arith.constant 0 : i32
    %c0_i32_0 = arith.constant 0 : i32
    return %arg0, %arg1, %c0_i32 : i32, i32, i32
  }
}

</mosaic_0001>

<bundles_post_ra>
// kernel: wavenet_forward.1
= control target key start
LH: loop header
LB: loop body
LE: loop exit
PB: predicated region body
PF: predicated region fallthrough
CT: control target
= control target key end

     0   :  { %s2218_s21 = smov 0   ;;  %s2220_s22 = smov 0   ;;  %s2617_s0 = inlined_call_operand.vmem [shape: f32[2,16,4], index: 0, kind: input, shape index: {}]   ;;  %s2618_s1 = inlined_call_operand.vmem [shape: f32[2,16,16], index: 1, kind: input, shape index: {}]   ;;  %s2619_s2 = inlined_call_operand.vmem [shape: bf16[4,32], index: 2, kind: input, shape index: {}]   ;;  %s2620_s3 = inlined_call_operand.vmem [shape: f32[1,32], index: 3, kind: input, shape index: {}]   ;;  %s2621_s4 = inlined_call_operand.vmem [shape: bf16[6,80,64], index: 4, kind: input, shape index: {}]   ;;  %s2622_s5 = inlined_call_operand.vmem [shape: f32[6,1,64], index: 5, kind: input, shape index: {}]   ;;  %s2623_s6 = inlined_call_operand.vmem [shape: bf16[6,32,64], index: 6, kind: input, shape index: {}]   ;;  %s2624_s7 = inlined_call_operand.vmem [shape: f32[6,1,64], index: 7, kind: input, shape index: {}]   ;;  %s2625_s8 = inlined_call_operand.vmem [shape: bf16[32,32], index: 8, kind: input, shape index: {}]   ;;  %s2626_s9 = inlined_call_operand.vmem [shape: f32[1,32], index: 9, kind: input, shape index: {}]   ;;  %s2627_s10 = inlined_call_operand.vmem [shape: bf16[32,128], index: 10, kind: input, shape index: {}]   ;;  %s2628_s11 = inlined_call_operand.vmem [shape: f32[1,128], index: 11, kind: input, shape index: {}]   ;;  %s2629_s12 = inlined_call_operand.vmem [shape: f32[2,16,128], index: 12, kind: output, shape index: {}]  }
   0x1   :  { %s2222_s23 = smov 0   ;;  %s2224_s24 = smov 0  }
   0x2   :  { %s2226_s25 = smov 0  }
   0x3 LB: > { %s31_s26 = sadd.s32 1, %s2139_s23  ;;  %s34_s27 = sadd.s32 1, %s2143_s24  ;;  %s2147_s25 = sphi %s2226_s25, %s22_s25   ;;  %s2143_s24 = sphi %s2224_s24, %s2637_s24   ;;  %s2139_s23 = sphi %s2222_s23, %s2636_s23   ;;  %s2135_s22 = sphi %s2220_s22, %s2635_s22   ;;  %s2131_s21 = sphi %s2218_s21, %s2634_s21  }
   0x4   : > { %p32_p0 = scmp.ge.s32.totalorder %s31_s26, 2  ;;  %p1673_p1 = scmp.ge.s32.totalorder %s2147_s25, 1 }
   0x5   : > { %p396_p2 = scmp.lt.s32.totalorder %s2147_s25, 5 }
   0x6   : > { %s2639_s26 = smov (%p32_p0, %s31_s26), 0  ;;  %s2641_s27 = smov (!%p32_p0, %s34_s27), %s2143_s24 }
   0x7   : > { %2630 = sst [smem:[#allocation3_spill]] %s2639_s26  ;;  %p397_p3 = pnand %p1673_p1, %p396_p2 }
   0x8   : > { %p36_p4 = scmp.ge.s32.totalorder %s2641_s27, 2  ;;  %p452_p5 = scmp.lt.s32.totalorder (!%p397_p3), %s2135_s22, 1 }
   0x9   : > { %400 = sbr.rel (%p397_p3) target bundleno = 4119 (0x1017), region = 68  ;;  %p454_p6 = scmp.lt.s32.totalorder (!%p397_p3), %s2131_s21, 1 }
   0xa   : > { %s2643_s27 = smov (%p36_p4, %s2641_s27), 0  ;;  %p1680_p7 = scmp.ne.s32.totalorder (!%p397_p3), %s2131_s21, 0 }
   0xb   : > { %2631 = sst [smem:[#allocation4_spill]] %s2643_s27 }
   0xe   : > { %s2645_s22 = smov (!%p452_p5, %s2135_s22), 1 }
   0xf   : > { %s455_s28 = scalar_select %p454_p6, %s2131_s21, 1 }
  0x10   : > { %s1674_s29 = sshll.u32 %s2645_s22, 1  ;;  %480 = sbr.rel (%p1680_p7) target bundleno = 41 (0x29), region = 72 }
  0x11   : > { %s457_s30 = sadd.s32 %s1674_s29, %s455_s28 }
  0x12   : > { %s2248_s13 = sshll.u32 %s457_s30, 3 }
  0x13   : > { %s459_s16 = scalar_lea.vmem %s2617_s0, %s2248_s13  ;;  %s467_s19 = scalar_lea.vmem %s2618_s1, %s2248_s13 }
  0x14   : > { %s475_s26 = scalar_lea.vmem %s2629_s12, %s2248_s13 }
  0x15   : > { %vm481_vm0 = vcmask 261120   ;;  %v2149_v0 = vmov 0.0  }
  0x16   : > { %483 = vst.msk [vmem:[#allocation2 + $0x8] sm:$0xff] %vm481_vm0, %v2149_v0 }
  0x17   : > { %484 = vst.msk [vmem:[#allocation2 + $0x10] sm:$0xff] %vm481_vm0, %v2149_v0 }
  0x18   : > { %485 = vst.msk [vmem:[#allocation2 + $0x18] sm:$0xff] %vm481_vm0, %v2149_v0 }
  0x19   : > { %487 = vst.msk [vmem:[#allocation2 + $0x28] sm:$0xff] %vm481_vm0, %v2149_v0 }
  0x1a   : > { %488 = vst.msk [vmem:[#allocation2 + $0x30] sm:$0xff] %vm481_vm0, %v2149_v0 }
  0x1b   : > { %489 = vst.msk [vmem:[#allocation2 + $0x38] sm:$0xff] %vm481_vm0, %v2149_v0 }
  0x1c   : > { %491 = vst.msk [vmem:[#allocation2 + $0x48] sm:$0xff] %vm481_vm0, %v2149_v0 }
  0x1d   : > { %492 = vst.msk [vmem:[#allocation2 + $0x50] sm:$0xff] %vm481_vm0, %v2149_v0 }
  0x1e   : > { %493 = vst.msk [vmem:[#allocation2 + $0x58] sm:$0xff] %vm481_vm0, %v2149_v0 }
  0x1f   : > { %495 = vst.msk [vmem:[#allocation2 + $0x68] sm:$0xff] %vm481_vm0, %v2149_v0 }
  0x20   : > { %496 = vst.msk [vmem:[#allocation2 + $0x70] sm:$0xff] %vm481_vm0, %v2149_v0 }
  0x21   : > { %497 = vst.msk [vmem:[#allocation2 + $0x78] sm:$0xff] %vm481_vm0, %v2149_v0 }
  0x22   : > { %499 = vst.msk [vmem:[#allocation2 + $0x88] sm:$0xff] %vm481_vm0, %v2149_v0 }
  0x23   : > { %500 = vst.msk [vmem:[#allocation2 + $0x90] sm:$0xff] %vm481_vm0, %v2149_v0 }
  0x24   : > { %501 = vst.msk [vmem:[#allocation2 + $0x98] sm:$0xff] %vm481_vm0, %v2149_v0 }
  0x25   : > { %502 = vst.msk [vmem:[#allocation2 + $0xa0] sm:$0xff] %vm481_vm0, %v2149_v0 }
  0x26   : > { %503 = vst.msk [vmem:[#allocation2 + $0xa8] sm:$0xff] %vm481_vm0, %v2149_v0 }
  0x27   : > { %504 = vst.msk [vmem:[#allocation2 + $0xb0] sm:$0xff] %vm481_vm0, %v2149_v0 }
  0x28   : > { %505 = vst.msk [vmem:[#allocation2 + $0xb8] sm:$0xff] %vm481_vm0, %v2149_v0 }
  0x29 PF: > { %v510_v1 = vld [vmem:[%s2619_s2] sm:$0x3]  ;;  %vm519_vm1 = vcmask 1041408   ;;  %vm515_vm2 = vcmask 31744   ;;  %v537_v5 = vld [vmem:[#allocation2 + $0x10] sm:$0xff]  ;;  %vm539_vm3 = vcmask 261120  }
  0x2a   : > { %v506_v2 = vld [vmem:[%s459_s16] sm:$0xff]  ;;  %v521_v3 = vsel %vm519_vm1, %v510_v1, 0  ;;  %v538_v6 = vld [vmem:[#allocation2 + $0x18] sm:$0xff]  ;;  %541 = vst.msk [vmem:[#allocation2 + $0x8] sm:$0xff] %vm539_vm3, %v537_v5  ;;  %s2150_s16 = smov 32   ;;  %s2151_s17 = smov 64  }
  0x2b   : > { %v507_v4 = vpack.c.bf16 %v506_v2, %v506_v2  ;;  %530 = vmatpush.bf16.msra.mxu1 %v521_v3  ;;  %542 = vst.msk [vmem:[#allocation2 + $0x10] sm:$0xff] %vm539_vm3, %v538_v6  ;;  %v1972_v7 = vld [vmem:[%s2621_s4 + $0x20] sm:$0xff]  ;;  %v544_v11 = vpack.c.bf16 %v538_v6, %v538_v6  ;;  %v1971_v32 = vld [vmem:[%s2621_s4 + $0x18] sm:$0xff]  ;;  %v1970_v33 = vld [vmem:[%s2621_s4 + $0x10] sm:$0xff]  ;;  %vm578_vm4 = vcmask 523264   ;;  %vm632_vm5 = vcmask 654336  }
  0x2c   : > { %v508_v8 = vld [vmem:[%s467_s19] sm:$0xff]  ;;  %v1969_v34 = vld [vmem:[%s2621_s4 + $0x8] sm:$0xff]  ;;  %s2152_s19 = smov 96   ;;  %v720_v5 = vld [vmem:[#allocation2 + $0x38] sm:$0xff] }
  0x2d   : > { %v2058_v9 = vld [vmem:[%s2620_s3] ss:$0 sm:$0xff]  ;;  %v509_v10 = vpack.c.bf16 %v508_v8, %v508_v8  ;;  %v548_v16 = vunpack.c.l.b16 %v544_v11  ;;  %v1974_v46 = vld [vmem:[%s2623_s6 + $0x8] sm:$0xff] }
  0x2e   : > { %1681 = vmatmul.msk.bf16.vlgmr.msra.gmra.mxu1 %vm515_vm2, %v507_v4  ;;  %v1968_v35 = vld [vmem:[%s2621_s4] sm:$0xff]  ;;  %704 = vmatpush.bf16.msra.mxu2 %v1974_v46  ;;  %v719_v4 = vld [vmem:[#allocation2 + $0x30] sm:$0xff] }
  0x2f   : > { %639 = vmatpush.bf16.msrb.mxu1 %v1972_v7  ;;  %v563_v15 = vunpack.c.l.b16 %v509_v10  ;;  %v2059_v45 = vld [vmem:[%s2622_s5] ss:$0 sm:$0xff]  ;;  %722 = vst.msk [vmem:[#allocation2 + $0x28] sm:$0xff] %vm539_vm3, %v719_v4  ;;  %v1979_v10 = vld [vmem:[%s2621_s4 + $0x48] sm:$0xff] }
  0x30   : > { %v1973_v63 = vld [vmem:[%s2623_s6] sm:$0xff]  ;;  %723 = vst.msk [vmem:[#allocation2 + $0x30] sm:$0xff] %vm539_vm3, %v720_v5  ;;  %798 = vmatpush.bf16.msra.mxu3 %v1979_v10 }
  0x31   : > { %v2303_v19 = vpack.c.b16 %v563_v15, %v563_v15  ;;  %v2060_v6 = vld [vmem:[%s2624_s7] ss:$0 sm:$0xff] }
  0x32   : > { %705 = vmatpush.bf16.msra.mxu2 %v1973_v63  ;;  %v1978_v11 = vld [vmem:[%s2621_s4 + $0x40] sm:$0xff] }
  0x33   : > { %v566_v26 = vshrl.u32 %v2303_v19, 16  ;;  %v569_v27 = vshll.u32 %v2303_v19, 16  ;;  %640 = vmatpush.bf16.msrb.mxu1 %v1971_v32  ;;  %v1981_v32 = vld [vmem:[%s2623_s6 + $0x18] sm:$0xff]  ;;  %v1984_v63 = vld [vmem:[%s2621_s4 + $0x60] sm:$0xff] }
  0x34   : > { %799 = vmatpush.bf16.msra.mxu3 %v1978_v11  ;;  %865 = vmatpush.bf16.msra.mxu0 %v1981_v32 }
  0x35   : > { %v568_v29 = vrot.slane %v566_v26, 4  ;;  %v571_v30 = vrot.slane %v569_v27, 5 }
  0x37   : > { %v572_v31 = vor.u32 %v571_v30, %v568_v29  ;;  %641 = vmatpush.bf16.msrb.mxu1 %v1970_v33 }
  0x3b   : > { %642 = vmatpush.bf16.msrb.mxu1 %v1969_v34 }
  0x3f   : > { %643 = vmatpush.bf16.msrb.mxu1 %v1968_v35 }
  0xab   : > { %v532_v12 = vpop.f32.mrf.mxu1 }
  0xac   : > { %v2297_v13 = vadd.f32 %v2058_v9, %v532_v12 }
  0xae   : > { %543 = vst.msk [vmem:[#allocation2 + $0x18] sm:$0xff] %vm539_vm3, %v2297_v13  ;;  %v545_v14 = vpack.c.bf16 %v2297_v13, %v2297_v13 }
  0xb0   : > { %v549_v17 = vunpack.c.l.b16 %v545_v14 }
  0xb2   : > { %v551_v18 = vpack.c.b16 %v549_v17, %v549_v17  ;;  %v550_v20 = vpack.c.b16 %v549_v17, %v548_v16 }
  0xb3   : > { %v534_v21 = vpop.f32.mrf.mxu1 }
  0xb4   : > { %v553_v22 = vshrl.u32 %v551_v18, 16  ;;  %v556_v23 = vshll.u32 %v551_v18, 16  ;;  %v1976_v21 = vld [vmem:[%s2621_s4 + $0x30] sm:$0xff] }
  0xb6   : > { %v555_v24 = vrot.slane %v553_v22, 4  ;;  %v558_v25 = vrot.slane %v556_v23, 5  ;;  %v1975_v22 = vld [vmem:[%s2621_s4 + $0x28] sm:$0xff]  ;;  %v725_v23 = vpack.c.bf16 %v720_v5, %v720_v5 }
  0xb8   : > { %v559_v28 = vor.u32 %v558_v25, %v555_v24  ;;  %v729_v25 = vunpack.c.l.b16 %v725_v23 }
  0xba   : > { %560 = vrot.lane.b32.xlu0 %v559_v28, %s2150_s16 }
  0xc2   : > { %573 = vrot.lane.b32.xlu0 %v572_v31, %s2151_s17  ;;  %v2061_v31 = vld [vmem:[%s2622_s5 + $0x1] ss:$0 sm:$0xff] }
 0x12c   : > { %v561_v36 = vpop.permute.xlu0 %560 }
 0x12d   : > { %v577_v37 = vsel %vm539_vm3, %v550_v20, %v561_v36  ;;  %v736_v20 = vrot.slane %v2303_v19, 5 }
 0x134   : > { %v574_v38 = vpop.permute.xlu0 %573 }
 0x135   : > { %v580_v39 = vsel %vm578_vm4, %v577_v37, %v574_v38 }
 0x136   : > { %v595_v40 = vshrl.u32 %v580_v39, 16  ;;  %v598_v41 = vshll.u32 %v580_v39, 16 }
 0x138   : > { %v597_v42 = vrot.slane %v595_v40, 3  ;;  %v600_v43 = vrot.slane %v598_v41, 4 }
 0x13a   : > { %v601_v44 = vor.u32 %v600_v43, %v597_v42 }
 0x13c   : > { %1702 = vmatmul.msk.bf16.vlgmr.msrb.gmra.mxu1 %vm632_vm5, %v601_v44 }
 0x1b9   : > { %v645_v47 = vpop.f32.mrf.mxu1 }
 0x1ba   : > { %v646_v48 = vadd.f32 %v2059_v45, %v645_v47 }
 0x1bc   : > { %v1703_v49 = vmul.f32 -1.442695, %v646_v48 }
 0x1be   : > { %2073 = vpow2.f32 %v1703_v49  ;;  %v1980_v49 = vld [vmem:[%s2623_s6 + $0x10] sm:$0xff] }
 0x1bf   : > { %866 = vmatpush.bf16.msra.mxu0 %v1980_v49  ;;  %v1992_v49 = vld [vmem:[%s2621_s4 + $0x90] sm:$0xff] }
 0x1c1   : > { %v647_v50 = vpop.f32.mrf.mxu1 }
 0x1c4   : > { %v2074_v51 = vpop.eup %2073 }
 0x1c5   : > { %v653_v52 = vadd.f32 1.0, %v2074_v51 }
 0x1c7   : > { %2075 = vrcp.f32 %v653_v52  ;;  %v665_v56 = vand.u32 2147483648, %v653_v52  ;;  %v663_v58 = vand.u32 2147483647, %v653_v52  ;;  %vm659_vm7 = vweird.f32 %v653_v52 }
 0x1c8   : > { %2077 = vtanh.f32 %v646_v48 }
 0x1c9   : > { %v666_v60 = vor.u32 1.1754944e-38, %v665_v56  ;;  %vm664_vm9 = vcmp.eq.f32.partialorder %v663_v58, 8.507059e+37  ;;  %v881_v56 = vld [vmem:[#allocation2 + $0x58] sm:$0xff] }
 0x1cd   : > { %v2076_v53 = vpop.eup %2075 }
 0x1ce   : > { %v655_v54 = vmul.f32 %v2076_v53, %v653_v52  ;;  %vm660_vm6 = vweird.f32 %v2076_v53  ;;  %v2078_v0 = vpop.eup %2077 }
 0x1cf   : > { %vm661_vm8 = vmor %vm659_vm7, %vm660_vm6 }
 0x1d0   : > { %v656_v55 = vsub.f32 1.0, %v655_v54  ;;  %v897_v54 = vrot.slane %v2303_v19, 6 }
 0x1d2   : > { %v657_v57 = vmul.f32 %v2076_v53, %v656_v55  ;;  %v880_v55 = vld [vmem:[#allocation2 + $0x50] sm:$0xff] }
 0x1d3   : > { %883 = vst.msk [vmem:[#allocation2 + $0x48] sm:$0xff] %vm539_vm3, %v880_v55 }
 0x1d4   : > { %v658_v59 = vadd.f32 %v2076_v53, %v657_v57  ;;  %884 = vst.msk [vmem:[#allocation2 + $0x50] sm:$0xff] %vm539_vm3, %v881_v56  ;;  %v2062_v57 = vld [vmem:[%s2624_s7 + $0x1] ss:$0 sm:$0xff] }
 0x1d6   : > { %v662_v61 = vsel %vm661_vm8, %v2076_v53, %v658_v59 }
 0x1d7   : > { %v667_v62 = vsel %vm664_vm9, %v666_v60, %v662_v61  ;;  %v1986_v61 = vld [vmem:[%s2621_s4 + $0x70] sm:$0xff] }
 0x1d8   : > { %670 = vrot.lane.b32.xlu1 %v667_v62, %s2152_s19  ;;  %959 = vmatpush.bf16.msrb.mxu2 %v1986_v61  ;;  %v1985_v62 = vld [vmem:[%s2621_s4 + $0x68] sm:$0xff] }
 0x1dc   : > { %960 = vmatpush.bf16.msrb.mxu2 %v1985_v62  ;;  %v2065_v62 = vld [vmem:[%s2622_s5 + $0x3] ss:$0 sm:$0xff] }
 0x1e0   : > { %961 = vmatpush.bf16.msrb.mxu2 %v1984_v63  ;;  %v1995_v63 = vld [vmem:[%s2623_s6 + $0x38] sm:$0xff] }
 0x24a   : > { %v671_v1 = vpop.permute.xlu1 %670 }
 0x24b   : > { %v673_v2 = vmul.f32 %v2078_v0, %v671_v1  ;;  %v1983_v0 = vld [vmem:[%s2621_s4 + $0x58] sm:$0xff] }
 0x24c   : > { %962 = vmatpush.bf16.msrb.mxu2 %v1983_v0 }
 0x24d   : > { %v674_v3 = vpack.c.bf16 %v673_v2, %v673_v2 }
 0x24f   : > { %1712 = vmatmul.msk.bf16.vlgmr.msra.gmra.mxu2 %vm539_vm3, %v674_v3 }
 0x2d2   : > { %v707_v7 = vpop.f32.mrf.mxu2 }
 0x2d3   : > { %v2340_v8 = vadd.f32 %v2060_v6, %v707_v7  ;;  %v1982_v7 = vld [vmem:[%s2621_s4 + $0x50] sm:$0xff] }
 0x2d4   : > { %963 = vmatpush.bf16.msrb.mxu2 %v1982_v7 }
 0x2d5   : > { %713 = vrot.lane.b32.xlu1 %v2340_v8, %s2152_s19 }
 0x2da   : > { %v709_v9 = vpop.f32.mrf.mxu2 }
 0x2db   : > { %v886_v9 = vpack.c.bf16 %v881_v56, %v881_v56 }
 0x2dd   : > { %v890_v10 = vunpack.c.l.b16 %v886_v9 }
 0x347   : > { %v714_v12 = vpop.permute.xlu1 %713 }
 0x348   : > { %v2351_v14 = vadd.f32 %v714_v12, %v2297_v13  ;;  %v1977_v13 = vld [vmem:[%s2621_s4 + $0x38] sm:$0xff] }
 0x349   : > { %800 = vmatpush.bf16.msra.mxu3 %v1977_v13 }
 0x34a   : > { %724 = vst.msk [vmem:[#allocation2 + $0x38] sm:$0xff] %vm539_vm3, %v2351_v14  ;;  %v726_v15 = vpack.c.bf16 %v2351_v14, %v2351_v14 }
 0x34c   : > { %v730_v16 = vunpack.c.l.b16 %v726_v15 }
 0x34d   : > { %801 = vmatpush.bf16.msra.mxu3 %v1976_v21 }
 0x34e   : > { %v732_v17 = vpack.c.b16 %v730_v16, %v730_v16  ;;  %v731_v26 = vpack.c.b16 %v730_v16, %v729_v25 }
 0x350   : > { %v733_v18 = vrot.slane %v732_v17, 5 }
 0x351   : > { %802 = vmatpush.bf16.msra.mxu3 %v1975_v22  ;;  %v1987_v22 = vld [vmem:[%s2623_s6 + $0x20] sm:$0xff] }
 0x352   : > { %734 = vrot.lane.b32.xlu2 %v733_v18, %s2150_s16  ;;  %v2063_v18 = vld [vmem:[%s2622_s5 + $0x2] ss:$0 sm:$0xff] }
 0x355   : > { %1179 = vmatpush.bf16.msrb.mxu3 %v1995_v63 }
 0x35a   : > { %737 = vrot.lane.b32.xlu2 %v736_v20, %s2151_s17  ;;  %v1988_v20 = vld [vmem:[%s2623_s6 + $0x28] sm:$0xff] }
 0x35b   : > { %1026 = vmatpush.bf16.msrb.mxu0 %v1988_v20 }
 0x35f   : > { %1027 = vmatpush.bf16.msrb.mxu0 %v1987_v22 }
 0x3ac   : > { %v735_v24 = vpop.permute.xlu2 %734 }
 0x3ad   : > { %v741_v27 = vsel %vm539_vm3, %v731_v26, %v735_v24 }
 0x3b4   : > { %v738_v28 = vpop.permute.xlu2 %737 }
 0x3b5   : > { %v743_v29 = vsel %vm578_vm4, %v741_v27, %v738_v28 }
 0x3b6   : > { %v761_v30 = vrot.slane %v743_v29, 3 }
 0x3b8   : > { %1744 = vmatmul.msk.bf16.vlgmr.msra.gmra.mxu3 %vm632_vm5, %v761_v30 }
 0x43b   : > { %v804_v33 = vpop.f32.mrf.mxu3 }
 0x43c   : > { %v805_v34 = vadd.f32 %v2061_v31, %v804_v33 }
 0x43e   : > { %v1745_v35 = vmul.f32 -1.442695, %v805_v34 }
 0x440   : > { %2079 = vpow2.f32 %v1745_v35 }
 0x443   : > { %v806_v36 = vpop.f32.mrf.mxu3 }
 0x446   : > { %v2080_v37 = vpop.eup %2079 }
 0x447   : > { %v812_v38 = vadd.f32 1.0, %v2080_v37 }
 0x449   : > { %2081 = vrcp.f32 %v812_v38  ;;  %v824_v42 = vand.u32 2147483648, %v812_v38  ;;  %v822_v44 = vand.u32 2147483647, %v812_v38  ;;  %vm818_vm11 = vweird.f32 %v812_v38 }
 0x44a   : > { %2083 = vtanh.f32 %v805_v34 }
 0x44b   : > { %v825_v46 = vor.u32 1.1754944e-38, %v824_v42  ;;  %vm823_vm13 = vcmp.eq.f32.partialorder %v822_v44, 8.507059e+37  ;;  %v1042_v42 = vld [vmem:[#allocation2 + $0x78] sm:$0xff] }
 0x44f   : > { %v2082_v39 = vpop.eup %2081 }
 0x450   : > { %v814_v40 = vmul.f32 %v2082_v39, %v812_v38  ;;  %vm819_vm10 = vweird.f32 %v2082_v39  ;;  %v2084_v50 = vpop.eup %2083 }
 0x451   : > { %vm820_vm12 = vmor %vm818_vm11, %vm819_vm10 }
 0x452   : > { %v815_v41 = vsub.f32 1.0, %v814_v40 }
 0x454   : > { %v816_v43 = vmul.f32 %v2082_v39, %v815_v41  ;;  %v1041_v41 = vld [vmem:[#allocation2 + $0x70] sm:$0xff] }
 0x455   : > { %1044 = vst.msk [vmem:[#allocation2 + $0x68] sm:$0xff] %vm539_vm3, %v1041_v41 }
 0x456   : > { %v817_v45 = vadd.f32 %v2082_v39, %v816_v43  ;;  %1045 = vst.msk [vmem:[#allocation2 + $0x70] sm:$0xff] %vm539_vm3, %v1042_v42  ;;  %v2064_v43 = vld [vmem:[%s2624_s7 + $0x2] ss:$0 sm:$0xff] }
 0x458   : > { %v821_v47 = vsel %vm820_vm12, %v2082_v39, %v817_v45 }
 0x459   : > { %v826_v48 = vsel %vm823_vm13, %v825_v46, %v821_v47 }
 0x45a   : > { %829 = vrot.lane.b32.xlu0 %v826_v48, %s2152_s19  ;;  %v1993_v48 = vld [vmem:[%s2621_s4 + $0x98] sm:$0xff] }
 0x45b   : > { %1112 = vmatpush.bf16.msra.mxu1 %v1993_v48 }
 0x45f   : > { %1113 = vmatpush.bf16.msra.mxu1 %v1992_v49 }
 0x462   : > { %898 = vrot.lane.b32.xlu0 %v897_v54, %s2151_s17 }
 0x4cc   : > { %v830_v51 = vpop.permute.xlu0 %829 }
 0x4cd   : > { %v832_v52 = vmul.f32 %v2084_v50, %v830_v51  ;;  %v1990_v50 = vld [vmem:[%s2621_s4 + $0x80] sm:$0xff]  ;;  %v1989_v51 = vld [vmem:[%s2621_s4 + $0x78] sm:$0xff] }
 0x4cf   : > { %v833_v53 = vpack.c.bf16 %v832_v52, %v832_v52 }
 0x4d1   : > { %1759 = vmatmul.msk.bf16.vlgmr.msra.gmra.mxu0 %vm539_vm3, %v833_v53 }
 0x4d4   : > { %v899_v12 = vpop.permute.xlu0 %898 }
 0x54e   : > { %v868_v58 = vpop.f32.mrf.mxu0 }
 0x54f   : > { %v2390_v59 = vadd.f32 %v2062_v57, %v868_v58  ;;  %v1047_v57 = vpack.c.bf16 %v1042_v42, %v1042_v42 }
 0x551   : > { %874 = vrot.lane.b32.xlu1 %v2390_v59, %s2152_s19 }
 0x556   : > { %v870_v60 = vpop.f32.mrf.mxu0 }
 0x5c3   : > { %v875_v1 = vpop.permute.xlu1 %874 }
 0x5c4   : > { %v2407_v2 = vadd.f32 %v875_v1, %v2351_v14 }
 0x5c6   : > { %885 = vst.msk [vmem:[#allocation2 + $0x58] sm:$0xff] %vm539_vm3, %v2407_v2  ;;  %v887_v3 = vpack.c.bf16 %v2407_v2, %v2407_v2 }
 0x5c8   : > { %v891_v4 = vunpack.c.l.b16 %v887_v3 }
 0x5ca   : > { %v893_v5 = vpack.c.b16 %v891_v4, %v891_v4  ;;  %v892_v11 = vpack.c.b16 %v891_v4, %v890_v10 }
 0x5cc   : > { %v894_v6 = vrot.slane %v893_v5, 6 }
 0x5ce   : > { %895 = vrot.lane.b32.xlu2 %v894_v6, %s2150_s16 }
 0x628   : > { %v896_v14 = vpop.permute.xlu2 %895 }
 0x629   : > { %v902_v15 = vsel %vm539_vm3, %v892_v11, %v896_v14 }
 0x62a   : > { %v904_v16 = vsel %vm578_vm4, %v902_v15, %v899_v12 }
 0x62b   : > { %v922_v17 = vrot.slane %v904_v16, 2 }
 0x62d   : > { %1791 = vmatmul.msk.bf16.vlgmr.msrb.gmra.mxu2 %vm632_vm5, %v922_v17 }
 0x6b0   : > { %v965_v13 = vpop.f32.mrf.mxu2 }
 0x6b1   : > { %v966_v21 = vadd.f32 %v2063_v18, %v965_v13 }
 0x6b3   : > { %v1792_v23 = vmul.f32 -1.442695, %v966_v21 }
 0x6b5   : > { %2085 = vpow2.f32 %v1792_v23  ;;  %v2066_v23 = vld [vmem:[%s2624_s7 + $0x3] ss:$0 sm:$0xff] }
 0x6b8   : > { %v967_v24 = vpop.f32.mrf.mxu2 }
 0x6bb   : > { %v2086_v25 = vpop.eup %2085 }
 0x6bc   : > { %v973_v26 = vadd.f32 1.0, %v2086_v25 }
 0x6be   : > { %2087 = vrcp.f32 %v973_v26  ;;  %v985_v30 = vand.u32 2147483648, %v973_v26  ;;  %v983_v32 = vand.u32 2147483647, %v973_v26  ;;  %vm979_vm15 = vweird.f32 %v973_v26 }
 0x6bf   : > { %2089 = vtanh.f32 %v966_v21 }
 0x6c0   : > { %v986_v34 = vor.u32 1.1754944e-38, %v985_v30  ;;  %vm984_vm1 = vcmp.eq.f32.partialorder %v983_v32, 8.507059e+37  ;;  %v1194_v30 = vld [vmem:[#allocation2 + $0x90] sm:$0xff] }
 0x6c1   : > { %1197 = vst.msk [vmem:[#allocation2 + $0x88] sm:$0xff] %vm539_vm3, %v1194_v30  ;;  %v1998_v32 = vld [vmem:[%s2621_s4 + $0xb0] sm:$0xff] }
 0x6c4   : > { %v2088_v27 = vpop.eup %2087 }
 0x6c5   : > { %v975_v28 = vmul.f32 %v2088_v27, %v973_v26  ;;  %vm980_vm14 = vweird.f32 %v2088_v27  ;;  %v2090_v37 = vpop.eup %2089 }
 0x6c6   : > { %vm981_vm0 = vmor %vm979_vm15, %vm980_vm14 }
 0x6c7   : > { %v976_v29 = vsub.f32 1.0, %v975_v28  ;;  %v2000_v28 = vld [vmem:[%s2621_s4 + $0xc0] sm:$0xff] }
 0x6c8   : > { %1262 = vmatpush.bf16.msra.mxu2 %v2000_v28  ;;  %v2009_v28 = vld [vmem:[%s2623_s6 + $0x58] sm:$0xff] }
 0x6c9   : > { %v977_v31 = vmul.f32 %v2088_v27, %v976_v29  ;;  %v1999_v29 = vld [vmem:[%s2621_s4 + $0xb8] sm:$0xff] }
 0x6cb   : > { %v978_v33 = vadd.f32 %v2088_v27, %v977_v31  ;;  %v1195_v31 = vld [vmem:[#allocation2 + $0x98] sm:$0xff] }
 0x6cc   : > { %1198 = vst.msk [vmem:[#allocation2 + $0x90] sm:$0xff] %vm539_vm3, %v1195_v31  ;;  %1263 = vmatpush.bf16.msra.mxu2 %v1999_v29  ;;  %v2008_v31 = vld [vmem:[%s2623_s6 + $0x50] sm:$0xff] }
 0x6cd   : > { %v982_v35 = vsel %vm981_vm0, %v2088_v27, %v978_v33  ;;  %v1997_v33 = vld [vmem:[%s2621_s4 + $0xa8] sm:$0xff] }
 0x6ce   : > { %v987_v36 = vsel %vm984_vm1, %v986_v34, %v982_v35  ;;  %v1996_v34 = vld [vmem:[%s2621_s4 + $0xa0] sm:$0xff] }
 0x6cf   : > { %990 = vrot.lane.b32.xlu1 %v987_v36, %s2152_s19 }
 0x6d0   : > { %1264 = vmatpush.bf16.msra.mxu2 %v1998_v32 }
 0x6d4   : > { %1265 = vmatpush.bf16.msra.mxu2 %v1997_v33 }
 0x6d7   : > { %1054 = vrot.lane.b32.xlu1 %v2303_v19, %s2151_s17  ;;  %v872_v19 = vadd.f32 %v2390_v59, %v2340_v8  ;;  %v1991_v8 = vld [vmem:[%s2621_s4 + $0x88] sm:$0xff] }
 0x6d8   : > { %1114 = vmatpush.bf16.msra.mxu1 %v1991_v8  ;;  %1266 = vmatpush.bf16.msra.mxu2 %v1996_v34 }
 0x6dc   : > { %1115 = vmatpush.bf16.msra.mxu1 %v1990_v50 }
 0x6e0   : > { %1116 = vmatpush.bf16.msra.mxu1 %v1989_v51 }
 0x6e4   : > { %1480 = vmatpush.bf16.msrb.mxu1 %v2009_v28 }
 0x6e8   : > { %1481 = vmatpush.bf16.msrb.mxu1 %v2008_v31 }
 0x741   : > { %v991_v38 = vpop.permute.xlu1 %990 }
 0x742   : > { %v993_v39 = vmul.f32 %v2090_v37, %v991_v38 }
 0x744   : > { %v994_v40 = vpack.c.bf16 %v993_v39, %v993_v39 }
 0x746   : > { %1806 = vmatmul.msk.bf16.vlgmr.msrb.gmra.mxu0 %vm539_vm3, %v994_v40  ;;  %v1200_v40 = vpack.c.bf16 %v1194_v30, %v1194_v30 }
 0x749   : > { %v2466_v58 = vpop.permute.xlu1 %1054 }
 0x7c3   : > { %v1029_v44 = vpop.f32.mrf.mxu0 }
 0x7c4   : > { %v1030_v45 = vadd.f32 %v2064_v43, %v1029_v44  ;;  %v2067_v44 = vld [vmem:[%s2622_s5 + $0x4] ss:$0 sm:$0xff] }
 0x7c6   : > { %v2440_v46 = vadd.f32 %v1030_v45, %v872_v19  ;;  %1035 = vrot.lane.b32.xlu2 %v1030_v45, %s2152_s19  ;;  %v2002_v19 = vld [vmem:[%s2623_s6 + $0x48] sm:$0xff] }
 0x7c7   : > { %1329 = vmatpush.bf16.msra.mxu0 %v2002_v19  ;;  %v2011_v19 = vld [vmem:[%s2625_s8 + $0x8] sm:$0xff] }
 0x7c8   : > { %1519 = vmatpush.bf16.msrb.mxu2 %v2011_v19 }
 0x7cb   : > { %v1031_v47 = vpop.f32.mrf.mxu0 }
 0x7cc   : > { %v2001_v47 = vld [vmem:[%s2623_s6 + $0x40] sm:$0xff] }
 0x7cd   : > { %1330 = vmatpush.bf16.msra.mxu0 %v2001_v47 }
 0x820   : > { %v1036_v52 = vpop.permute.xlu2 %1035 }
 0x821   : > { %v2459_v53 = vadd.f32 %v1036_v52, %v2407_v2  ;;  %v1994_v2 = vld [vmem:[%s2623_s6 + $0x30] sm:$0xff] }
 0x822   : > { %1180 = vmatpush.bf16.msrb.mxu3 %v1994_v2  ;;  %v1345_v2 = vld [vmem:[#allocation2 + $0xb0] sm:$0xff] }
 0x823   : > { %1046 = vst.msk [vmem:[#allocation2 + $0x78] sm:$0xff] %vm539_vm3, %v2459_v53  ;;  %v1048_v54 = vpack.c.bf16 %v2459_v53, %v2459_v53 }
 0x825   : > { %v1050_v55 = vunpack.c.l.b16 %v1048_v54 }
 0x827   : > { %v1051_v56 = vpack.c.b16 %v1050_v55, %v1050_v55 }
 0x829   : > { %1052 = vrot.lane.b32.xlu0 %v1051_v56, %s2150_s16 }
 0x89b   : > { %v1053_v59 = vpop.permute.xlu0 %1052 }
 0x89c   : > { %v1058_v60 = vsel %vm539_vm3, %v1047_v57, %v1053_v59 }
 0x89d   : > { %v1060_v61 = vsel %vm578_vm4, %v1058_v60, %v2466_v58 }
 0x89e   : > { %1838 = vmatmul.msk.bf16.vlgmr.msra.gmra.mxu1 %vm632_vm5, %v1060_v61 }
 0x91b   : > { %v1118_v0 = vpop.f32.mrf.mxu1 }
 0x91c   : > { %v1119_v1 = vadd.f32 %v2065_v62, %v1118_v0 }
 0x91e   : > { %v1839_v3 = vmul.f32 -1.442695, %v1119_v1 }
 0x920   : > { %2091 = vpow2.f32 %v1839_v3  ;;  %v1346_v3 = vld [vmem:[#allocation2 + $0xb8] sm:$0xff] }
 0x921   : > { %1349 = vst.msk [vmem:[#allocation2 + $0xb0] sm:$0xff] %vm539_vm3, %v1346_v3 }
 0x923   : > { %v1120_v4 = vpop.f32.mrf.mxu1 }
 0x924   : > { %v2068_v4 = vld [vmem:[%s2624_s7 + $0x4] ss:$0 sm:$0xff] }
 0x926   : > { %v2092_v5 = vpop.eup %2091 }
 0x927   : > { %v1126_v6 = vadd.f32 1.0, %v2092_v5 }
 0x929   : > { %2093 = vrcp.f32 %v1126_v6  ;;  %v1138_v11 = vand.u32 2147483648, %v1126_v6  ;;  %v1136_v14 = vand.u32 2147483647, %v1126_v6  ;;  %vm1132_vm6 = vweird.f32 %v1126_v6 }
 0x92a   : > { %2095 = vtanh.f32 %v1119_v1 }
 0x92b   : > { %v1139_v16 = vor.u32 1.1754944e-38, %v1138_v11  ;;  %vm1137_vm8 = vcmp.eq.f32.partialorder %v1136_v14, 8.507059e+37  ;;  %v2006_v11 = vld [vmem:[%s2621_s4 + $0xe0] sm:$0xff]  ;;  %v1344_v14 = vld [vmem:[#allocation2 + $0xa8] sm:$0xff] }
 0x92c   : > { %1348 = vst.msk [vmem:[#allocation2 + $0xa8] sm:$0xff] %vm539_vm3, %v1345_v2 }
 0x92f   : > { %v2094_v7 = vpop.eup %2093 }
 0x930   : > { %v1128_v9 = vmul.f32 %v2094_v7, %v1126_v6  ;;  %vm1133_vm2 = vweird.f32 %v2094_v7  ;;  %v2096_v20 = vpop.eup %2095 }
 0x931   : > { %vm1134_vm7 = vmor %vm1132_vm6, %vm1133_vm2 }
 0x932   : > { %v1129_v10 = vsub.f32 1.0, %v1128_v9 }
 0x934   : > { %v1130_v12 = vmul.f32 %v2094_v7, %v1129_v10  ;;  %v2007_v10 = vld [vmem:[%s2621_s4 + $0xe8] sm:$0xff] }
 0x935   : > { %1413 = vmatpush.bf16.msra.mxu3 %v2007_v10 }
 0x936   : > { %v1131_v15 = vadd.f32 %v2094_v7, %v1130_v12  ;;  %v1343_v12 = vld [vmem:[#allocation2 + $0xa0] sm:$0xff] }
 0x937   : > { %1347 = vst.msk [vmem:[#allocation2 + $0xa0] sm:$0xff] %vm539_vm3, %v1344_v14 }
 0x938   : > { %v1135_v17 = vsel %vm1134_vm7, %v2094_v7, %v1131_v15  ;;  %v2005_v15 = vld [vmem:[%s2621_s4 + $0xd8] sm:$0xff] }
 0x939   : > { %v1140_v18 = vsel %vm1137_vm8, %v1139_v16, %v1135_v17  ;;  %1414 = vmatpush.bf16.msra.mxu3 %v2006_v11  ;;  %v2004_v16 = vld [vmem:[%s2621_s4 + $0xd0] sm:$0xff]  ;;  %v2003_v17 = vld [vmem:[%s2621_s4 + $0xc8] sm:$0xff] }
 0x93a   : > { %1143 = vrot.lane.b32.xlu2 %v1140_v18, %s2152_s19 }
 0x93d   : > { %1415 = vmatpush.bf16.msra.mxu3 %v2005_v15 }
 0x941   : > { %1416 = vmatpush.bf16.msra.mxu3 %v2004_v16 }
 0x945   : > { %1417 = vmatpush.bf16.msra.mxu3 %v2003_v17 }
 0x994   : > { %v1144_v13 = vpop.permute.xlu2 %1143 }
 0x995   : > { %v1146_v21 = vmul.f32 %v2096_v20, %v1144_v13 }
 0x997   : > { %v1147_v22 = vpack.c.bf16 %v1146_v21, %v1146_v21 }
 0x999   : > { %1853 = vmatmul.msk.bf16.vlgmr.msrb.gmra.mxu3 %vm539_vm3, %v1147_v22 }
 0xa1c   : > { %v1182_v24 = vpop.f32.mrf.mxu3 }
 0xa1d   : > { %v1183_v25 = vadd.f32 %v2066_v23, %v1182_v24  ;;  %v1351_v23 = vpack.c.bf16 %v1343_v12, %v1343_v12 }
 0xa1f   : > { %v2487_v26 = vadd.f32 %v1183_v25, %v2440_v46  ;;  %1188 = vrot.lane.b32.xlu0 %v1183_v25, %s2152_s19 }
 0xa24   : > { %v1184_v27 = vpop.f32.mrf.mxu3 }
 0xa25   : > { %v2069_v27 = vld [vmem:[%s2622_s5 + $0x5] ss:$0 sm:$0xff] }
 0xa91   : > { %v1189_v35 = vpop.permute.xlu0 %1188 }
 0xa92   : > { %v2508_v36 = vadd.f32 %v1189_v35, %v2459_v53 }
 0xa94   : > { %1199 = vst.msk [vmem:[#allocation2 + $0x98] sm:$0xff] %vm539_vm3, %v2508_v36  ;;  %v1201_v37 = vpack.c.bf16 %v2508_v36, %v2508_v36 }
 0xa96   : > { %v1203_v38 = vunpack.c.l.b16 %v1201_v37 }
 0xa98   : > { %v1204_v39 = vpack.c.b16 %v1203_v38, %v1203_v38 }
 0xa9a   : > { %1205 = vrot.lane.b32.xlu1 %v1204_v39, %s2150_s16 }
 0xb0c   : > { %v1206_v41 = vpop.permute.xlu1 %1205 }
 0xb0d   : > { %v1209_v42 = vsel %vm539_vm3, %v1200_v40, %v1206_v41 }
 0xb0e   : > { %v1210_v43 = vsel %vm578_vm4, %v1209_v42, %v2466_v58 }
 0xb0f   : > { %1885 = vmatmul.msk.bf16.vlgmr.msra.gmra.mxu2 %vm632_vm5, %v1210_v43 }
 0xb92   : > { %v1268_v45 = vpop.f32.mrf.mxu2 }
 0xb93   : > { %v1269_v46 = vadd.f32 %v2067_v44, %v1268_v45 }
 0xb95   : > { %v1886_v48 = vmul.f32 -1.442695, %v1269_v46 }
 0xb97   : > { %2097 = vpow2.f32 %v1886_v48 }
 0xb9a   : > { %v1270_v49 = vpop.f32.mrf.mxu2 }
 0xb9b   : > { %v2010_v49 = vld [vmem:[%s2625_s8] sm:$0xff] }
 0xb9c   : > { %1520 = vmatpush.bf16.msrb.mxu2 %v2010_v49 }
 0xb9d   : > { %v2098_v8 = vpop.eup %2097 }
 0xb9e   : > { %v1276_v50 = vadd.f32 1.0, %v2098_v8  ;;  %v2013_v8 = vld [vmem:[%s2627_s10 + $0x8] sm:$0xff] }
 0xb9f   : > { %1557 = vmatpush.bf16.msrb.mxu0 %v2013_v8 }
 0xba0   : > { %2099 = vrcp.f32 %v1276_v50  ;;  %v1288_v54 = vand.u32 2147483648, %v1276_v50  ;;  %v1286_v56 = vand.u32 2147483647, %v1276_v50  ;;  %vm1282_vm10 = vweird.f32 %v1276_v50 }
 0xba1   : > { %2101 = vtanh.f32 %v1269_v46 }
 0xba2   : > { %v1289_v59 = vor.u32 1.1754944e-38, %v1288_v54  ;;  %vm1287_vm12 = vcmp.eq.f32.partialorder %v1286_v56, 8.507059e+37 }
 0xba6   : > { %v2100_v51 = vpop.eup %2099 }
 0xba7   : > { %v1278_v52 = vmul.f32 %v2100_v51, %v1276_v50  ;;  %vm1283_vm9 = vweird.f32 %v2100_v51  ;;  %v2102_v62 = vpop.eup %2101  ;;  %v2012_v50 = vld [vmem:[%s2627_s10] sm:$0xff] }
 0xba8   : > { %vm1284_vm11 = vmor %vm1282_vm10, %vm1283_vm9  ;;  %1558 = vmatpush.bf16.msrb.mxu0 %v2012_v50 }
 0xba9   : > { %v1279_v53 = vsub.f32 1.0, %v1278_v52 }
 0xbab   : > { %v1280_v55 = vmul.f32 %v2100_v51, %v1279_v53 }
 0xbad   : > { %v1281_v57 = vadd.f32 %v2100_v51, %v1280_v55 }
 0xbaf   : > { %v1285_v60 = vsel %vm1284_vm11, %v2100_v51, %v1281_v57  ;;  %v2070_v51 = vld [vmem:[%s2624_s7 + $0x5] ss:$0 sm:$0xff] }
 0xbb0   : > { %v1290_v61 = vsel %vm1287_vm12, %v1289_v59, %v1285_v60  ;;  %v2071_v59 = vld [vmem:[%s2626_s9] ss:$0 sm:$0xff] }
 0xbb1   : > { %1293 = vrot.lane.b32.xlu2 %v1290_v61, %s2152_s19 }
 0xc0b   : > { %v1294_v63 = vpop.permute.xlu2 %1293 }
 0xc0c   : > { %v1296_v0 = vmul.f32 %v2102_v62, %v1294_v63 }
 0xc0e   : > { %v1297_v1 = vpack.c.bf16 %v1296_v0, %v1296_v0 }
 0xc10   : > { %1900 = vmatmul.msk.bf16.vlgmr.msra.gmra.mxu0 %vm539_vm3, %v1297_v1  ;;  %v2072_v1 = vld [vmem:[%s2628_s11] ss:$0 sm:$0xff] }
 0xc8d   : > { %v1332_v5 = vpop.f32.mrf.mxu0 }
 0xc8e   : > { %v1333_v6 = vadd.f32 %v2068_v4, %v1332_v5 }
 0xc90   : > { %v2535_v7 = vadd.f32 %v1333_v6, %v2487_v26  ;;  %1338 = vrot.lane.b32.xlu0 %v1333_v6, %s2152_s19 }
 0xc95   : > { %v1334_v9 = vpop.f32.mrf.mxu0 }
 0xd02   : > { %v1339_v18 = vpop.permute.xlu0 %1338 }
 0xd03   : > { %v1341_v20 = vadd.f32 %v1339_v18, %v2508_v36 }
 0xd05   : > { %1350 = vst.msk [vmem:[#allocation2 + $0xb8] sm:$0xff] %vm539_vm3, %v1341_v20  ;;  %v1352_v13 = vpack.c.bf16 %v1341_v20, %v1341_v20 }
 0xd07   : > { %v1354_v21 = vunpack.c.l.b16 %v1352_v13 }
 0xd09   : > { %v1355_v22 = vpack.c.b16 %v1354_v21, %v1354_v21 }
 0xd0b   : > { %1356 = vrot.lane.b32.xlu1 %v1355_v22, %s2150_s16 }
 0xd7d   : > { %v1357_v24 = vpop.permute.xlu1 %1356 }
 0xd7e   : > { %v1360_v25 = vsel %vm539_vm3, %v1351_v23, %v1357_v24 }
 0xd7f   : > { %v1361_v26 = vsel %vm578_vm4, %v1360_v25, %v2466_v58 }
 0xd80   : > { %1932 = vmatmul.msk.bf16.vlgmr.msra.gmra.mxu3 %vm632_vm5, %v1361_v26 }
 0xe03   : > { %v1419_v29 = vpop.f32.mrf.mxu3 }
 0xe04   : > { %v1420_v30 = vadd.f32 %v2069_v27, %v1419_v29 }
 0xe06   : > { %v1933_v32 = vmul.f32 -1.442695, %v1420_v30 }
 0xe08   : > { %2103 = vpow2.f32 %v1933_v32 }
 0xe0b   : > { %v1421_v58 = vpop.f32.mrf.mxu3 }
 0xe0e   : > { %v2104_v33 = vpop.eup %2103 }
 0xe0f   : > { %v1427_v34 = vadd.f32 1.0, %v2104_v33 }
 0xe11   : > { %2105 = vrcp.f32 %v1427_v34  ;;  %v1439_v38 = vand.u32 2147483648, %v1427_v34  ;;  %v1437_v40 = vand.u32 2147483647, %v1427_v34  ;;  %vm1433_vm5 = vweird.f32 %v1427_v34 }
 0xe12   : > { %2107 = vtanh.f32 %v1420_v30 }
 0xe13   : > { %v1440_v42 = vor.u32 1.1754944e-38, %v1439_v38  ;;  %vm1438_vm14 = vcmp.eq.f32.partialorder %v1437_v40, 8.507059e+37 }
 0xe17   : > { %v2106_v35 = vpop.eup %2105 }
 0xe18   : > { %v1429_v36 = vmul.f32 %v2106_v35, %v1427_v34  ;;  %vm1434_vm4 = vweird.f32 %v2106_v35  ;;  %v2108_v45 = vpop.eup %2107 }
 0xe19   : > { %vm1435_vm13 = vmor %vm1433_vm5, %vm1434_vm4 }
 0xe1a   : > { %v1430_v37 = vsub.f32 1.0, %v1429_v36 }
 0xe1c   : > { %v1431_v39 = vmul.f32 %v2106_v35, %v1430_v37 }
 0xe1e   : > { %v1432_v41 = vadd.f32 %v2106_v35, %v1431_v39 }
 0xe20   : > { %v1436_v43 = vsel %vm1435_vm13, %v2106_v35, %v1432_v41 }
 0xe21   : > { %v1441_v44 = vsel %vm1438_vm14, %v1440_v42, %v1436_v43 }
 0xe22   : > { %1444 = vrot.lane.b32.xlu2 %v1441_v44, %s2152_s19 }
 0xe7c   : > { %v1445_v46 = vpop.permute.xlu2 %1444 }
 0xe7d   : > { %v1447_v47 = vmul.f32 %v2108_v45, %v1445_v46 }
 0xe7f   : > { %v1448_v48 = vpack.c.bf16 %v1447_v47, %v1447_v47 }
 0xe81   : > { %1947 = vmatmul.msk.bf16.vlgmr.msrb.gmra.mxu1 %vm539_vm3, %v1448_v48 }
 0xefe   : > { %v1483_v52 = vpop.f32.mrf.mxu1 }
 0xeff   : > { %v1484_v53 = vadd.f32 %v2070_v51, %v1483_v52 }
 0xf01   : > { %v1487_v54 = vadd.f32 %v1484_v53, %v2535_v7 }
 0xf03   : > { %v1488_v55 = vmax.f32 %v1487_v54, 0.0 }
 0xf05   : > { %v1489_v56 = vpack.c.bf16 %v1488_v55, %v1488_v55 }
 0xf06   : > { %v1485_v57 = vpop.f32.mrf.mxu1 }
 0xf07   : > { %1956 = vmatmul.msk.bf16.vlgmr.msrb.gmra.mxu2 %vm539_vm3, %v1489_v56 }
 0xf8a   : > { %v1522_v60 = vpop.f32.mrf.mxu2 }
 0xf8b   : > { %v1523_v61 = vadd.f32 %v2071_v59, %v1522_v60 }
 0xf8d   : > { %v1526_v62 = vmax.f32 %v1523_v61, 0.0 }
 0xf8f   : > { %v1527_v63 = vpack.c.bf16 %v1526_v62, %v1526_v62 }
 0xf91   : > { %1965 = vmatmul.msk.bf16.vlgmr.msrb.gmra.mxu0 %vm539_vm3, %v1527_v63 }
 0xf92   : > { %v1524_v0 = vpop.f32.mrf.mxu2 }
0x100e   : > { %v1560_v2 = vpop.f32.mrf.mxu0 }
0x100f   : > { %v1561_v3 = vadd.f32 %v2072_v1, %v1560_v2 }
0x1011   : > { %1564 = vst [vmem:[%s475_s26] sm:$0xff] %v1561_v3 }
0x1016   : > { %v1562_v4 = vpop.f32.mrf.mxu0 }
0x1017 PF: > { %s22_s25 = sadd.s32 1, %s2147_s25   ;;  %s2632_s18 = sld [smem:[#allocation3_spill]] }
0x1018   : > { %p19_p8 = scmp.ge.s32.totalorder %s22_s25, 6   ;;  %s2633_s17 = sld [smem:[#allocation4_spill]] }
0x1019   : > { %s2634_s21 = smov %s2139_s23  ;;  %s2635_s22 = smov %s2143_s24 }
0x101a   :  { %21 = sbr.rel (!%p19_p8) target bundleno = 3 (0x3), region = 130 }
0x101d   : > { %s2636_s23 = smov %s2632_s18 }
0x101e   : > { %s2637_s24 = smov %s2633_s17 }

</bundles_post_ra>
